<compile_context>
chip_gen: v7x
topology: tpu7x:2x2x1
jax: 0.10.0
libtpu: 0.0.40
codegen_flags: <defaults>
</compile_context>

<pallas_src>
import functools
import math

import jax
import jax.numpy as jnp
from jax.experimental import pallas as pl
from jax.experimental.pallas import tpu as pltpu


# ---------------------------------------------------------------------------
# Kernel 1: Attention (one program per batch element).
# ---------------------------------------------------------------------------
def _attention_kernel(x_ref, wq_ref, bq_ref, wk_ref, bk_ref, wv_ref, bv_ref,
                      o_ref, *, num_heads):
    x = x_ref[0]                                         # (S, D) f32
    s_len, d = x.shape
    h = num_heads
    dh = d // h
    scale = 1.0 / math.sqrt(dh)

    # QKV projections: MXU matmuls with f32 accumulation.
    q = jnp.dot(x, wq_ref[...], preferred_element_type=jnp.float32) + bq_ref[...]
    k = jnp.dot(x, wk_ref[...], preferred_element_type=jnp.float32) + bk_ref[...]
    v = jnp.dot(x, wv_ref[...], preferred_element_type=jnp.float32) + bv_ref[...]

    # Per-position head-mixing attention (H x H scores per position), done
    # with 2-D lane slices + VPU/XLU ops since H and Dh are tiny.
    # TODO(synk): for large H/Dh switch to a batched einsum on the MXU.
    head_outs = []
    for h1 in range(h):
        qh = q[:, h1 * dh:(h1 + 1) * dh]                 # (S, Dh)
        cols = []
        for h2 in range(h):
            kh = k[:, h2 * dh:(h2 + 1) * dh]
            cols.append(jnp.sum(qh * kh, axis=-1, keepdims=True))     # (S, 1)
        scores = jnp.concatenate(cols, axis=-1) * scale  # (S, H)
        m = jnp.max(scores, axis=-1, keepdims=True)
        p = jnp.exp(scores - m)
        p = p / jnp.sum(p, axis=-1, keepdims=True)       # softmax over heads
        oh = jnp.zeros((s_len, dh), jnp.float32)
        for h2 in range(h):
            vh = v[:, h2 * dh:(h2 + 1) * dh]
            oh = oh + p[:, h2:h2 + 1] * vh
        head_outs.append(oh)

    # Heads concatenated along the lane axis == flattened (S, H, Dh) layout.
    o_ref[0] = jnp.concatenate(head_outs, axis=-1).astype(o_ref.dtype)


# ---------------------------------------------------------------------------
# Kernel 2: ComplexMoE mixer (one program per batch element).
# ---------------------------------------------------------------------------
def _moe_kernel(x_ref, wg_ref, bg_ref, w1_ref, b1_ref, w2_ref, b2_ref,
                o_ref, *, num_experts):
    x = x_ref[0]                                         # (S, D) f32
    s_len, d = x.shape

    # Gating: softmax_e( mean_seq(x) @ Wg^T + bg ).  E is tiny, so use a
    # broadcast-multiply + lane reduction; softmax runs along the sublane
    # (expert) axis.
    x_avg = jnp.mean(x, axis=0, keepdims=True)           # (1, D)
    logits = jnp.sum(x_avg * wg_ref[...], axis=-1, keepdims=True) + bg_ref[...]  # (E, 1)
    m = jnp.max(logits, axis=0, keepdims=True)
    g = jnp.exp(logits - m)
    gates = g / jnp.sum(g, axis=0, keepdims=True)        # (E, 1)

    c = math.sqrt(2.0 / math.pi)
    acc = jnp.zeros((s_len, d), jnp.float32)
    # TODO(synk): for many experts, promote this unrolled loop to a grid axis
    # with an accumulator scratch (P3 pattern) instead.
    for e in range(num_experts):
        hid = jnp.dot(x, w1_ref[e], preferred_element_type=jnp.float32) + b1_ref[e]
        hid = 0.5 * hid * (1.0 + jnp.tanh(c * (hid + 0.044715 * hid * hid * hid)))
        y = jnp.dot(hid, w2_ref[e], preferred_element_type=jnp.float32) + b2_ref[e]
        acc = acc + gates[e:e + 1, 0:1] * y
    o_ref[0] = acc.astype(o_ref.dtype)


# ---------------------------------------------------------------------------
# Wrapper: full TransformerBlock forward.
# ---------------------------------------------------------------------------
def transformer_block(x, params, *, num_heads, num_experts):
    wq, bq, wk, bk, wv, bv, wg, bg, w1, b1, w2, b2 = params  # torch layouts
    B, S, D = x.shape
    H = num_heads
    Dh = D // H
    E = num_experts
    f32 = jnp.float32

    x_spec = pl.BlockSpec((1, S, D), lambda b: (b, 0, 0))
    w_spec = pl.BlockSpec((D, D), lambda b: (0, 0))
    b_spec = pl.BlockSpec((1, D), lambda b: (0, 0))
    par = pltpu.CompilerParams(dimension_semantics=("parallel",))

    # ---- Attention --------------------------------------------------------
    attn_cost = pl.CostEstimate(
        flops=int(B * (6 * S * D * D + 4 * S * H * H * Dh)),
        transcendentals=int(B * S * H * H),
        bytes_accessed=int(4 * (2 * B * S * D + 3 * D * D + 3 * D)),
    )
    attn = pl.pallas_call(
        functools.partial(_attention_kernel, num_heads=H),
        out_shape=jax.ShapeDtypeStruct((B, S, D), f32),
        grid=(B,),
        in_specs=[x_spec, w_spec, b_spec, w_spec, b_spec, w_spec, b_spec],
        out_specs=x_spec,
        compiler_params=par,
        cost_estimate=attn_cost,
    )(x, wq.T, bq.reshape(1, D), wk.T, bk.reshape(1, D), wv.T, bv.reshape(1, D))

    # Torch's out.transpose(1, 2).contiguous().view(B, -1, H*Dh) -- pure
    # layout plumbing, done in the wrapper.
    attn = attn.reshape(B, S, H, Dh).transpose(0, 2, 1, 3).reshape(B, -1, D)

    # ---- ComplexMoE mixer --------------------------------------------------
    moe_cost = pl.CostEstimate(
        flops=int(B * (2 * E * D + 4 * E * S * D * D)),
        transcendentals=int(B * E * (S * D + 1)),
        bytes_accessed=int(4 * (2 * B * S * D + E * D + E + 2 * E * D * D + 2 * E * D)),
    )
    out = pl.pallas_call(
        functools.partial(_moe_kernel, num_experts=E),
        out_shape=jax.ShapeDtypeStruct((B, S, D), f32),
        grid=(B,),
        in_specs=[
            x_spec,
            pl.BlockSpec((E, D), lambda b: (0, 0)),       # Wg (torch layout)
            pl.BlockSpec((E, 1), lambda b: (0, 0)),       # bg
            pl.BlockSpec((E, D, D), lambda b: (0, 0, 0)), # W1 (transposed per-expert)
            pl.BlockSpec((E, 1, D), lambda b: (0, 0, 0)), # b1
            pl.BlockSpec((E, D, D), lambda b: (0, 0, 0)), # W2 (transposed per-expert)
            pl.BlockSpec((E, 1, D), lambda b: (0, 0, 0)), # b2
        ],
        out_specs=x_spec,
        compiler_params=par,
        cost_estimate=moe_cost,
    )(attn, wg, bg.reshape(E, 1),
      jnp.transpose(w1, (0, 2, 1)), b1.reshape(E, 1, D),
      jnp.transpose(w2, (0, 2, 1)), b2.reshape(E, 1, D))
    return out


# ---------------------------------------------------------------------------
# Pure-JAX reference implementing exactly the torch math.
# ---------------------------------------------------------------------------
def _reference_block(x, params, *, num_heads, num_experts):
    wq, bq, wk, bk, wv, bv, wg, bg, w1, b1, w2, b2 = params
    B, S, D = x.shape
    H = num_heads
    Dh = D // H

    q = (x @ wq.T + bq).reshape(B, S, H, Dh)
    k = (x @ wk.T + bk).reshape(B, S, H, Dh)
    v = (x @ wv.T + bv).reshape(B, S, H, Dh)
    scores = jnp.matmul(q, jnp.swapaxes(k, -2, -1)) / math.sqrt(Dh)   # (B,S,H,H)
    attn = jax.nn.softmax(scores, axis=-1)
    out = jnp.matmul(attn, v)                                         # (B,S,H,Dh)
    out = jnp.transpose(out, (0, 2, 1, 3)).reshape(B, -1, H * Dh)     # (B,S,D)

    x_avg = jnp.mean(out, axis=1)                                     # (B,D)
    gates = jax.nn.softmax(x_avg @ wg.T + bg, axis=-1)                # (B,E)
    c = math.sqrt(2.0 / math.pi)
    expert_outs = []
    for e in range(num_experts):
        h = out @ w1[e].T + b1[e]
        h = 0.5 * h * (1.0 + jnp.tanh(c * (h + 0.044715 * h ** 3)))
        expert_outs.append(h @ w2[e].T + b2[e])
    eo = jnp.stack(expert_outs, axis=2)                               # (B,S,E,D)
    return jnp.sum(gates[:, None, :, None] * eo, axis=2)


if __name__ == "__main__":
    jax.config.update("jax_default_matmul_precision", "highest")

    # Small shapes consistent with the module.
    B, S, D = 2, 8, 32         # batch, seq, input_dim
    H, E = 4, 2                # num_heads, num_experts

    key = jax.random.PRNGKey(0)
    ks = jax.random.split(key, 13)
    sc = 0.25
    x = jax.random.normal(ks[0], (B, S, D), jnp.float32)
    wq = sc * jax.random.normal(ks[1], (D, D), jnp.float32)
    bq = sc * jax.random.normal(ks[2], (D,), jnp.float32)
    wk = sc * jax.random.normal(ks[3], (D, D), jnp.float32)
    bk = sc * jax.random.normal(ks[4], (D,), jnp.float32)
    wv = sc * jax.random.normal(ks[5], (D, D), jnp.float32)
    bv = sc * jax.random.normal(ks[6], (D,), jnp.float32)
    wg = sc * jax.random.normal(ks[7], (E, D), jnp.float32)
    bg = sc * jax.random.normal(ks[8], (E,), jnp.float32)
    w1 = sc * jax.random.normal(ks[9], (E, D, D), jnp.float32)
    b1 = sc * jax.random.normal(ks[10], (E, D), jnp.float32)
    w2 = sc * jax.random.normal(ks[11], (E, D, D), jnp.float32)
    b2 = sc * jax.random.normal(ks[12], (E, D), jnp.float32)
    params = (wq, bq, wk, bk, wv, bv, wg, bg, w1, b1, w2, b2)

    out = transformer_block(x, params, num_heads=H, num_experts=E)
    jax.block_until_ready(out)

    ref = _reference_block(x, params, num_heads=H, num_experts=E)
    assert out.shape == (B, S, D) and out.dtype == jnp.float32
    max_diff = float(jnp.max(jnp.abs(out - ref)))
    assert jnp.allclose(out, ref, atol=2e-3, rtol=2e-3), max_diff

    print("KERNEL_OK")
</pallas_src>

<mosaic_0001>
module attributes {stable_mosaic.version = 11 : i64} {
  func.func @_attention_kernel(%arg0: i32, %arg1: memref<1x8x32xf32, #tpu.memory_space<vmem>>, %arg2: memref<32x32xf32, #tpu.memory_space<vmem>>, %arg3: memref<1x32xf32, #tpu.memory_space<vmem>>, %arg4: memref<32x32xf32, #tpu.memory_space<vmem>>, %arg5: memref<1x32xf32, #tpu.memory_space<vmem>>, %arg6: memref<32x32xf32, #tpu.memory_space<vmem>>, %arg7: memref<1x32xf32, #tpu.memory_space<vmem>>, %arg8: memref<1x8x32xf32, #tpu.memory_space<vmem>>) attributes {dimension_semantics = [#tpu.dimension_semantics<parallel>], iteration_bounds = array<i64: 2>, scalar_prefetch = 0 : i64, scratch_operands = 0 : i64, tpu.core_type = #tpu.core_type<tc>, window_params = [{transform_indices = @transform_0, window_bounds = array<i64: 1, 8, 32>}, {pipeline_mode = #tpu.pipeline_mode<synchronous>, transform_indices = @transform_1, window_bounds = array<i64: 32, 32>}, {pipeline_mode = #tpu.pipeline_mode<synchronous>, transform_indices = @transform_2, window_bounds = array<i64: 1, 32>}, {pipeline_mode = #tpu.pipeline_mode<synchronous>, transform_indices = @transform_3, window_bounds = array<i64: 32, 32>}, {pipeline_mode = #tpu.pipeline_mode<synchronous>, transform_indices = @transform_4, window_bounds = array<i64: 1, 32>}, {pipeline_mode = #tpu.pipeline_mode<synchronous>, transform_indices = @transform_5, window_bounds = array<i64: 32, 32>}, {pipeline_mode = #tpu.pipeline_mode<synchronous>, transform_indices = @transform_6, window_bounds = array<i64: 1, 32>}, {transform_indices = @transform_7, window_bounds = array<i64: 1, 8, 32>}]} {
    %c0 = arith.constant 0 : index
    %c0_0 = arith.constant 0 : index
    %c0_1 = arith.constant 0 : index
    %0 = vector.load %arg1[%c0, %c0_0, %c0_1] : memref<1x8x32xf32, #tpu.memory_space<vmem>>, vector<1x8x32xf32>
    %1 = vector.shape_cast %0 : vector<1x8x32xf32> to vector<8x32xf32>
    %c0_2 = arith.constant 0 : index
    %c0_3 = arith.constant 0 : index
    %2 = vector.load %arg2[%c0_2, %c0_3] : memref<32x32xf32, #tpu.memory_space<vmem>>, vector<32x32xf32>
    %cst = arith.constant dense<0.000000e+00> : vector<8x32xf32>
    %3 = tpu.matmul %1, %2, %cst {dimension_numbers = #tpu.dot_dimension_numbers<[1], [0], [0], [1], [0, 0, 1, 1], [], []>, precision = #tpu.contract_precision<fp32>} : vector<8x32xf32>, vector<32x32xf32>, vector<8x32xf32> -> vector<8x32xf32>
    %c0_4 = arith.constant 0 : index
    %c0_5 = arith.constant 0 : index
    %4 = vector.load %arg3[%c0_4, %c0_5] : memref<1x32xf32, #tpu.memory_space<vmem>>, vector<1x32xf32>
    %5 = vector.broadcast %4 : vector<1x32xf32> to vector<8x32xf32>
    %6 = arith.addf %3, %5 : vector<8x32xf32>
    %c0_6 = arith.constant 0 : index
    %c0_7 = arith.constant 0 : index
    %7 = vector.load %arg4[%c0_6, %c0_7] : memref<32x32xf32, #tpu.memory_space<vmem>>, vector<32x32xf32>
    %cst_8 = arith.constant dense<0.000000e+00> : vector<8x32xf32>
    %8 = tpu.matmul %1, %7, %cst_8 {dimension_numbers = #tpu.dot_dimension_numbers<[1], [0], [0], [1], [0, 0, 1, 1], [], []>, precision = #tpu.contract_precision<fp32>} : vector<8x32xf32>, vector<32x32xf32>, vector<8x32xf32> -> vector<8x32xf32>
    %c0_9 = arith.constant 0 : index
    %c0_10 = arith.constant 0 : index
    %9 = vector.load %arg5[%c0_9, %c0_10] : memref<1x32xf32, #tpu.memory_space<vmem>>, vector<1x32xf32>
    %10 = vector.broadcast %9 : vector<1x32xf32> to vector<8x32xf32>
    %11 = arith.addf %8, %10 : vector<8x32xf32>
    %c0_11 = arith.constant 0 : index
    %c0_12 = arith.constant 0 : index
    %12 = vector.load %arg6[%c0_11, %c0_12] : memref<32x32xf32, #tpu.memory_space<vmem>>, vector<32x32xf32>
    %cst_13 = arith.constant dense<0.000000e+00> : vector<8x32xf32>
    %13 = tpu.matmul %1, %12, %cst_13 {dimension_numbers = #tpu.dot_dimension_numbers<[1], [0], [0], [1], [0, 0, 1, 1], [], []>, precision = #tpu.contract_precision<fp32>} : vector<8x32xf32>, vector<32x32xf32>, vector<8x32xf32> -> vector<8x32xf32>
    %c0_14 = arith.constant 0 : index
    %c0_15 = arith.constant 0 : index
    %14 = vector.load %arg7[%c0_14, %c0_15] : memref<1x32xf32, #tpu.memory_space<vmem>>, vector<1x32xf32>
    %15 = vector.broadcast %14 : vector<1x32xf32> to vector<8x32xf32>
    %16 = arith.addf %13, %15 : vector<8x32xf32>
    %17 = vector.extract_strided_slice %6 {offsets = [0, 0], sizes = [8, 8], strides = [1, 1]} : vector<8x32xf32> to vector<8x8xf32>
    %18 = vector.extract_strided_slice %11 {offsets = [0, 0], sizes = [8, 8], strides = [1, 1]} : vector<8x32xf32> to vector<8x8xf32>
    %19 = arith.mulf %17, %18 : vector<8x8xf32>
    %cst_16 = arith.constant dense<0.000000e+00> : vector<8xf32>
    %20 = vector.multi_reduction <add>, %19, %cst_16 [1] : vector<8x8xf32> to vector<8xf32>
    %21 = vector.shape_cast %20 : vector<8xf32> to vector<8x1xf32>
    %22 = vector.extract_strided_slice %11 {offsets = [0, 8], sizes = [8, 8], strides = [1, 1]} : vector<8x32xf32> to vector<8x8xf32>
    %23 = arith.mulf %17, %22 : vector<8x8xf32>
    %cst_17 = arith.constant dense<0.000000e+00> : vector<8xf32>
    %24 = vector.multi_reduction <add>, %23, %cst_17 [1] : vector<8x8xf32> to vector<8xf32>
    %25 = vector.shape_cast %24 : vector<8xf32> to vector<8x1xf32>
    %26 = vector.extract_strided_slice %11 {offsets = [0, 16], sizes = [8, 8], strides = [1, 1]} : vector<8x32xf32> to vector<8x8xf32>
    %27 = arith.mulf %17, %26 : vector<8x8xf32>
    %cst_18 = arith.constant dense<0.000000e+00> : vector<8xf32>
    %28 = vector.multi_reduction <add>, %27, %cst_18 [1] : vector<8x8xf32> to vector<8xf32>
    %29 = vector.shape_cast %28 : vector<8xf32> to vector<8x1xf32>
    %30 = vector.extract_strided_slice %11 {offsets = [0, 24], sizes = [8, 8], strides = [1, 1]} : vector<8x32xf32> to vector<8x8xf32>
    %31 = arith.mulf %17, %30 : vector<8x8xf32>
    %cst_19 = arith.constant dense<0.000000e+00> : vector<8xf32>
    %32 = vector.multi_reduction <add>, %31, %cst_19 [1] : vector<8x8xf32> to vector<8xf32>
    %33 = vector.shape_cast %32 : vector<8xf32> to vector<8x1xf32>
    %34 = tpu.concatenate %21, %25, %29, %33 in 1 : vector<8x1xf32>, vector<8x1xf32>, vector<8x1xf32>, vector<8x1xf32> -> vector<8x4xf32>
    %cst_20 = arith.constant 0.353553385 : f32
    %35 = vector.broadcast %cst_20 : f32 to vector<8x4xf32>
    %36 = arith.mulf %34, %35 : vector<8x4xf32>
    %cst_21 = arith.constant dense<0xFF800000> : vector<8xf32>
    %37 = vector.multi_reduction <maximumf>, %36, %cst_21 [1] : vector<8x4xf32> to vector<8xf32>
    %38 = vector.shape_cast %37 : vector<8xf32> to vector<8x1xf32>
    %39 = vector.broadcast %38 : vector<8x1xf32> to vector<8x4xf32>
    %40 = arith.subf %36, %39 : vector<8x4xf32>
    %41 = math.exp %40 : vector<8x4xf32>
    %cst_22 = arith.constant dense<0.000000e+00> : vector<8xf32>
    %42 = vector.multi_reduction <add>, %41, %cst_22 [1] : vector<8x4xf32> to vector<8xf32>
    %43 = vector.shape_cast %42 : vector<8xf32> to vector<8x1xf32>
    %44 = vector.broadcast %43 : vector<8x1xf32> to vector<8x4xf32>
    %45 = arith.divf %41, %44 : vector<8x4xf32>
    %cst_23 = arith.constant 0.000000e+00 : f32
    %46 = vector.broadcast %cst_23 : f32 to vector<8x8xf32>
    %47 = vector.extract_strided_slice %16 {offsets = [0, 0], sizes = [8, 8], strides = [1, 1]} : vector<8x32xf32> to vector<8x8xf32>
    %48 = vector.extract_strided_slice %45 {offsets = [0, 0], sizes = [8, 1], strides = [1, 1]} : vector<8x4xf32> to vector<8x1xf32>
    %49 = vector.broadcast %48 : vector<8x1xf32> to vector<8x8xf32>
    %50 = arith.mulf %49, %47 : vector<8x8xf32>
    %51 = arith.addf %46, %50 : vector<8x8xf32>
    %52 = vector.extract_strided_slice %16 {offsets = [0, 8], sizes = [8, 8], strides = [1, 1]} : vector<8x32xf32> to vector<8x8xf32>
    %53 = vector.extract_strided_slice %45 {offsets = [0, 1], sizes = [8, 1], strides = [1, 1]} : vector<8x4xf32> to vector<8x1xf32>
    %54 = vector.broadcast %53 : vector<8x1xf32> to vector<8x8xf32>
    %55 = arith.mulf %54, %52 : vector<8x8xf32>
    %56 = arith.addf %51, %55 : vector<8x8xf32>
    %57 = vector.extract_strided_slice %16 {offsets = [0, 16], sizes = [8, 8], strides = [1, 1]} : vector<8x32xf32> to vector<8x8xf32>
    %58 = vector.extract_strided_slice %45 {offsets = [0, 2], sizes = [8, 1], strides = [1, 1]} : vector<8x4xf32> to vector<8x1xf32>
    %59 = vector.broadcast %58 : vector<8x1xf32> to vector<8x8xf32>
    %60 = arith.mulf %59, %57 : vector<8x8xf32>
    %61 = arith.addf %56, %60 : vector<8x8xf32>
    %62 = vector.extract_strided_slice %16 {offsets = [0, 24], sizes = [8, 8], strides = [1, 1]} : vector<8x32xf32> to vector<8x8xf32>
    %63 = vector.extract_strided_slice %45 {offsets = [0, 3], sizes = [8, 1], strides = [1, 1]} : vector<8x4xf32> to vector<8x1xf32>
    %64 = vector.broadcast %63 : vector<8x1xf32> to vector<8x8xf32>
    %65 = arith.mulf %64, %62 : vector<8x8xf32>
    %66 = arith.addf %61, %65 : vector<8x8xf32>
    %67 = vector.extract_strided_slice %6 {offsets = [0, 8], sizes = [8, 8], strides = [1, 1]} : vector<8x32xf32> to vector<8x8xf32>
    %68 = vector.extract_strided_slice %11 {offsets = [0, 0], sizes = [8, 8], strides = [1, 1]} : vector<8x32xf32> to vector<8x8xf32>
    %69 = arith.mulf %67, %68 : vector<8x8xf32>
    %cst_24 = arith.constant dense<0.000000e+00> : vector<8xf32>
    %70 = vector.multi_reduction <add>, %69, %cst_24 [1] : vector<8x8xf32> to vector<8xf32>
    %71 = vector.shape_cast %70 : vector<8xf32> to vector<8x1xf32>
    %72 = vector.extract_strided_slice %11 {offsets = [0, 8], sizes = [8, 8], strides = [1, 1]} : vector<8x32xf32> to vector<8x8xf32>
    %73 = arith.mulf %67, %72 : vector<8x8xf32>
    %cst_25 = arith.constant dense<0.000000e+00> : vector<8xf32>
    %74 = vector.multi_reduction <add>, %73, %cst_25 [1] : vector<8x8xf32> to vector<8xf32>
    %75 = vector.shape_cast %74 : vector<8xf32> to vector<8x1xf32>
    %76 = vector.extract_strided_slice %11 {offsets = [0, 16], sizes = [8, 8], strides = [1, 1]} : vector<8x32xf32> to vector<8x8xf32>
    %77 = arith.mulf %67, %76 : vector<8x8xf32>
    %cst_26 = arith.constant dense<0.000000e+00> : vector<8xf32>
    %78 = vector.multi_reduction <add>, %77, %cst_26 [1] : vector<8x8xf32> to vector<8xf32>
    %79 = vector.shape_cast %78 : vector<8xf32> to vector<8x1xf32>
    %80 = vector.extract_strided_slice %11 {offsets = [0, 24], sizes = [8, 8], strides = [1, 1]} : vector<8x32xf32> to vector<8x8xf32>
    %81 = arith.mulf %67, %80 : vector<8x8xf32>
    %cst_27 = arith.constant dense<0.000000e+00> : vector<8xf32>
    %82 = vector.multi_reduction <add>, %81, %cst_27 [1] : vector<8x8xf32> to vector<8xf32>
    %83 = vector.shape_cast %82 : vector<8xf32> to vector<8x1xf32>
    %84 = tpu.concatenate %71, %75, %79, %83 in 1 : vector<8x1xf32>, vector<8x1xf32>, vector<8x1xf32>, vector<8x1xf32> -> vector<8x4xf32>
    %cst_28 = arith.constant 0.353553385 : f32
    %85 = vector.broadcast %cst_28 : f32 to vector<8x4xf32>
    %86 = arith.mulf %84, %85 : vector<8x4xf32>
    %cst_29 = arith.constant dense<0xFF800000> : vector<8xf32>
    %87 = vector.multi_reduction <maximumf>, %86, %cst_29 [1] : vector<8x4xf32> to vector<8xf32>
    %88 = vector.shape_cast %87 : vector<8xf32> to vector<8x1xf32>
    %89 = vector.broadcast %88 : vector<8x1xf32> to vector<8x4xf32>
    %90 = arith.subf %86, %89 : vector<8x4xf32>
    %91 = math.exp %90 : vector<8x4xf32>
    %cst_30 = arith.constant dense<0.000000e+00> : vector<8xf32>
    %92 = vector.multi_reduction <add>, %91, %cst_30 [1] : vector<8x4xf32> to vector<8xf32>
    %93 = vector.shape_cast %92 : vector<8xf32> to vector<8x1xf32>
    %94 = vector.broadcast %93 : vector<8x1xf32> to vector<8x4xf32>
    %95 = arith.divf %91, %94 : vector<8x4xf32>
    %cst_31 = arith.constant 0.000000e+00 : f32
    %96 = vector.broadcast %cst_31 : f32 to vector<8x8xf32>
    %97 = vector.extract_strided_slice %16 {offsets = [0, 0], sizes = [8, 8], strides = [1, 1]} : vector<8x32xf32> to vector<8x8xf32>
    %98 = vector.extract_strided_slice %95 {offsets = [0, 0], sizes = [8, 1], strides = [1, 1]} : vector<8x4xf32> to vector<8x1xf32>
    %99 = vector.broadcast %98 : vector<8x1xf32> to vector<8x8xf32>
    %100 = arith.mulf %99, %97 : vector<8x8xf32>
    %101 = arith.addf %96, %100 : vector<8x8xf32>
    %102 = vector.extract_strided_slice %16 {offsets = [0, 8], sizes = [8, 8], strides = [1, 1]} : vector<8x32xf32> to vector<8x8xf32>
    %103 = vector.extract_strided_slice %95 {offsets = [0, 1], sizes = [8, 1], strides = [1, 1]} : vector<8x4xf32> to vector<8x1xf32>
    %104 = vector.broadcast %103 : vector<8x1xf32> to vector<8x8xf32>
    %105 = arith.mulf %104, %102 : vector<8x8xf32>
    %106 = arith.addf %101, %105 : vector<8x8xf32>
    %107 = vector.extract_strided_slice %16 {offsets = [0, 16], sizes = [8, 8], strides = [1, 1]} : vector<8x32xf32> to vector<8x8xf32>
    %108 = vector.extract_strided_slice %95 {offsets = [0, 2], sizes = [8, 1], strides = [1, 1]} : vector<8x4xf32> to vector<8x1xf32>
    %109 = vector.broadcast %108 : vector<8x1xf32> to vector<8x8xf32>
    %110 = arith.mulf %109, %107 : vector<8x8xf32>
    %111 = arith.addf %106, %110 : vector<8x8xf32>
    %112 = vector.extract_strided_slice %16 {offsets = [0, 24], sizes = [8, 8], strides = [1, 1]} : vector<8x32xf32> to vector<8x8xf32>
    %113 = vector.extract_strided_slice %95 {offsets = [0, 3], sizes = [8, 1], strides = [1, 1]} : vector<8x4xf32> to vector<8x1xf32>
    %114 = vector.broadcast %113 : vector<8x1xf32> to vector<8x8xf32>
    %115 = arith.mulf %114, %112 : vector<8x8xf32>
    %116 = arith.addf %111, %115 : vector<8x8xf32>
    %117 = vector.extract_strided_slice %6 {offsets = [0, 16], sizes = [8, 8], strides = [1, 1]} : vector<8x32xf32> to vector<8x8xf32>
    %118 = vector.extract_strided_slice %11 {offsets = [0, 0], sizes = [8, 8], strides = [1, 1]} : vector<8x32xf32> to vector<8x8xf32>
    %119 = arith.mulf %117, %118 : vector<8x8xf32>
    %cst_32 = arith.constant dense<0.000000e+00> : vector<8xf32>
    %120 = vector.multi_reduction <add>, %119, %cst_32 [1] : vector<8x8xf32> to vector<8xf32>
    %121 = vector.shape_cast %120 : vector<8xf32> to vector<8x1xf32>
    %122 = vector.extract_strided_slice %11 {offsets = [0, 8], sizes = [8, 8], strides = [1, 1]} : vector<8x32xf32> to vector<8x8xf32>
    %123 = arith.mulf %117, %122 : vector<8x8xf32>
    %cst_33 = arith.constant dense<0.000000e+00> : vector<8xf32>
    %124 = vector.multi_reduction <add>, %123, %cst_33 [1] : vector<8x8xf32> to vector<8xf32>
    %125 = vector.shape_cast %124 : vector<8xf32> to vector<8x1xf32>
    %126 = vector.extract_strided_slice %11 {offsets = [0, 16], sizes = [8, 8], strides = [1, 1]} : vector<8x32xf32> to vector<8x8xf32>
    %127 = arith.mulf %117, %126 : vector<8x8xf32>
    %cst_34 = arith.constant dense<0.000000e+00> : vector<8xf32>
    %128 = vector.multi_reduction <add>, %127, %cst_34 [1] : vector<8x8xf32> to vector<8xf32>
    %129 = vector.shape_cast %128 : vector<8xf32> to vector<8x1xf32>
    %130 = vector.extract_strided_slice %11 {offsets = [0, 24], sizes = [8, 8], strides = [1, 1]} : vector<8x32xf32> to vector<8x8xf32>
    %131 = arith.mulf %117, %130 : vector<8x8xf32>
    %cst_35 = arith.constant dense<0.000000e+00> : vector<8xf32>
    %132 = vector.multi_reduction <add>, %131, %cst_35 [1] : vector<8x8xf32> to vector<8xf32>
    %133 = vector.shape_cast %132 : vector<8xf32> to vector<8x1xf32>
    %134 = tpu.concatenate %121, %125, %129, %133 in 1 : vector<8x1xf32>, vector<8x1xf32>, vector<8x1xf32>, vector<8x1xf32> -> vector<8x4xf32>
    %cst_36 = arith.constant 0.353553385 : f32
    %135 = vector.broadcast %cst_36 : f32 to vector<8x4xf32>
    %136 = arith.mulf %134, %135 : vector<8x4xf32>
    %cst_37 = arith.constant dense<0xFF800000> : vector<8xf32>
    %137 = vector.multi_reduction <maximumf>, %136, %cst_37 [1] : vector<8x4xf32> to vector<8xf32>
    %138 = vector.shape_cast %137 : vector<8xf32> to vector<8x1xf32>
    %139 = vector.broadcast %138 : vector<8x1xf32> to vector<8x4xf32>
    %140 = arith.subf %136, %139 : vector<8x4xf32>
    %141 = math.exp %140 : vector<8x4xf32>
    %cst_38 = arith.constant dense<0.000000e+00> : vector<8xf32>
    %142 = vector.multi_reduction <add>, %141, %cst_38 [1] : vector<8x4xf32> to vector<8xf32>
    %143 = vector.shape_cast %142 : vector<8xf32> to vector<8x1xf32>
    %144 = vector.broadcast %143 : vector<8x1xf32> to vector<8x4xf32>
    %145 = arith.divf %141, %144 : vector<8x4xf32>
    %cst_39 = arith.constant 0.000000e+00 : f32
    %146 = vector.broadcast %cst_39 : f32 to vector<8x8xf32>
    %147 = vector.extract_strided_slice %16 {offsets = [0, 0], sizes = [8, 8], strides = [1, 1]} : vector<8x32xf32> to vector<8x8xf32>
    %148 = vector.extract_strided_slice %145 {offsets = [0, 0], sizes = [8, 1], strides = [1, 1]} : vector<8x4xf32> to vector<8x1xf32>
    %149 = vector.broadcast %148 : vector<8x1xf32> to vector<8x8xf32>
    %150 = arith.mulf %149, %147 : vector<8x8xf32>
    %151 = arith.addf %146, %150 : vector<8x8xf32>
    %152 = vector.extract_strided_slice %16 {offsets = [0, 8], sizes = [8, 8], strides = [1, 1]} : vector<8x32xf32> to vector<8x8xf32>
    %153 = vector.extract_strided_slice %145 {offsets = [0, 1], sizes = [8, 1], strides = [1, 1]} : vector<8x4xf32> to vector<8x1xf32>
    %154 = vector.broadcast %153 : vector<8x1xf32> to vector<8x8xf32>
    %155 = arith.mulf %154, %152 : vector<8x8xf32>
    %156 = arith.addf %151, %155 : vector<8x8xf32>
    %157 = vector.extract_strided_slice %16 {offsets = [0, 16], sizes = [8, 8], strides = [1, 1]} : vector<8x32xf32> to vector<8x8xf32>
    %158 = vector.extract_strided_slice %145 {offsets = [0, 2], sizes = [8, 1], strides = [1, 1]} : vector<8x4xf32> to vector<8x1xf32>
    %159 = vector.broadcast %158 : vector<8x1xf32> to vector<8x8xf32>
    %160 = arith.mulf %159, %157 : vector<8x8xf32>
    %161 = arith.addf %156, %160 : vector<8x8xf32>
    %162 = vector.extract_strided_slice %16 {offsets = [0, 24], sizes = [8, 8], strides = [1, 1]} : vector<8x32xf32> to vector<8x8xf32>
    %163 = vector.extract_strided_slice %145 {offsets = [0, 3], sizes = [8, 1], strides = [1, 1]} : vector<8x4xf32> to vector<8x1xf32>
    %164 = vector.broadcast %163 : vector<8x1xf32> to vector<8x8xf32>
    %165 = arith.mulf %164, %162 : vector<8x8xf32>
    %166 = arith.addf %161, %165 : vector<8x8xf32>
    %167 = vector.extract_strided_slice %6 {offsets = [0, 24], sizes = [8, 8], strides = [1, 1]} : vector<8x32xf32> to vector<8x8xf32>
    %168 = vector.extract_strided_slice %11 {offsets = [0, 0], sizes = [8, 8], strides = [1, 1]} : vector<8x32xf32> to vector<8x8xf32>
    %169 = arith.mulf %167, %168 : vector<8x8xf32>
    %cst_40 = arith.constant dense<0.000000e+00> : vector<8xf32>
    %170 = vector.multi_reduction <add>, %169, %cst_40 [1] : vector<8x8xf32> to vector<8xf32>
    %171 = vector.shape_cast %170 : vector<8xf32> to vector<8x1xf32>
    %172 = vector.extract_strided_slice %11 {offsets = [0, 8], sizes = [8, 8], strides = [1, 1]} : vector<8x32xf32> to vector<8x8xf32>
    %173 = arith.mulf %167, %172 : vector<8x8xf32>
    %cst_41 = arith.constant dense<0.000000e+00> : vector<8xf32>
    %174 = vector.multi_reduction <add>, %173, %cst_41 [1] : vector<8x8xf32> to vector<8xf32>
    %175 = vector.shape_cast %174 : vector<8xf32> to vector<8x1xf32>
    %176 = vector.extract_strided_slice %11 {offsets = [0, 16], sizes = [8, 8], strides = [1, 1]} : vector<8x32xf32> to vector<8x8xf32>
    %177 = arith.mulf %167, %176 : vector<8x8xf32>
    %cst_42 = arith.constant dense<0.000000e+00> : vector<8xf32>
    %178 = vector.multi_reduction <add>, %177, %cst_42 [1] : vector<8x8xf32> to vector<8xf32>
    %179 = vector.shape_cast %178 : vector<8xf32> to vector<8x1xf32>
    %180 = vector.extract_strided_slice %11 {offsets = [0, 24], sizes = [8, 8], strides = [1, 1]} : vector<8x32xf32> to vector<8x8xf32>
    %181 = arith.mulf %167, %180 : vector<8x8xf32>
    %cst_43 = arith.constant dense<0.000000e+00> : vector<8xf32>
    %182 = vector.multi_reduction <add>, %181, %cst_43 [1] : vector<8x8xf32> to vector<8xf32>
    %183 = vector.shape_cast %182 : vector<8xf32> to vector<8x1xf32>
    %184 = tpu.concatenate %171, %175, %179, %183 in 1 : vector<8x1xf32>, vector<8x1xf32>, vector<8x1xf32>, vector<8x1xf32> -> vector<8x4xf32>
    %cst_44 = arith.constant 0.353553385 : f32
    %185 = vector.broadcast %cst_44 : f32 to vector<8x4xf32>
    %186 = arith.mulf %184, %185 : vector<8x4xf32>
    %cst_45 = arith.constant dense<0xFF800000> : vector<8xf32>
    %187 = vector.multi_reduction <maximumf>, %186, %cst_45 [1] : vector<8x4xf32> to vector<8xf32>
    %188 = vector.shape_cast %187 : vector<8xf32> to vector<8x1xf32>
    %189 = vector.broadcast %188 : vector<8x1xf32> to vector<8x4xf32>
    %190 = arith.subf %186, %189 : vector<8x4xf32>
    %191 = math.exp %190 : vector<8x4xf32>
    %cst_46 = arith.constant dense<0.000000e+00> : vector<8xf32>
    %192 = vector.multi_reduction <add>, %191, %cst_46 [1] : vector<8x4xf32> to vector<8xf32>
    %193 = vector.shape_cast %192 : vector<8xf32> to vector<8x1xf32>
    %194 = vector.broadcast %193 : vector<8x1xf32> to vector<8x4xf32>
    %195 = arith.divf %191, %194 : vector<8x4xf32>
    %cst_47 = arith.constant 0.000000e+00 : f32
    %196 = vector.broadcast %cst_47 : f32 to vector<8x8xf32>
    %197 = vector.extract_strided_slice %16 {offsets = [0, 0], sizes = [8, 8], strides = [1, 1]} : vector<8x32xf32> to vector<8x8xf32>
    %198 = vector.extract_strided_slice %195 {offsets = [0, 0], sizes = [8, 1], strides = [1, 1]} : vector<8x4xf32> to vector<8x1xf32>
    %199 = vector.broadcast %198 : vector<8x1xf32> to vector<8x8xf32>
    %200 = arith.mulf %199, %197 : vector<8x8xf32>
    %201 = arith.addf %196, %200 : vector<8x8xf32>
    %202 = vector.extract_strided_slice %16 {offsets = [0, 8], sizes = [8, 8], strides = [1, 1]} : vector<8x32xf32> to vector<8x8xf32>
    %203 = vector.extract_strided_slice %195 {offsets = [0, 1], sizes = [8, 1], strides = [1, 1]} : vector<8x4xf32> to vector<8x1xf32>
    %204 = vector.broadcast %203 : vector<8x1xf32> to vector<8x8xf32>
    %205 = arith.mulf %204, %202 : vector<8x8xf32>
    %206 = arith.addf %201, %205 : vector<8x8xf32>
    %207 = vector.extract_strided_slice %16 {offsets = [0, 16], sizes = [8, 8], strides = [1, 1]} : vector<8x32xf32> to vector<8x8xf32>
    %208 = vector.extract_strided_slice %195 {offsets = [0, 2], sizes = [8, 1], strides = [1, 1]} : vector<8x4xf32> to vector<8x1xf32>
    %209 = vector.broadcast %208 : vector<8x1xf32> to vector<8x8xf32>
    %210 = arith.mulf %209, %207 : vector<8x8xf32>
    %211 = arith.addf %206, %210 : vector<8x8xf32>
    %212 = vector.extract_strided_slice %16 {offsets = [0, 24], sizes = [8, 8], strides = [1, 1]} : vector<8x32xf32> to vector<8x8xf32>
    %213 = vector.extract_strided_slice %195 {offsets = [0, 3], sizes = [8, 1], strides = [1, 1]} : vector<8x4xf32> to vector<8x1xf32>
    %214 = vector.broadcast %213 : vector<8x1xf32> to vector<8x8xf32>
    %215 = arith.mulf %214, %212 : vector<8x8xf32>
    %216 = arith.addf %211, %215 : vector<8x8xf32>
    %217 = tpu.concatenate %66, %116, %166, %216 in 1 : vector<8x8xf32>, vector<8x8xf32>, vector<8x8xf32>, vector<8x8xf32> -> vector<8x32xf32>
    %c0_48 = arith.constant 0 : index
    %c0_49 = arith.constant 0 : index
    %c0_50 = arith.constant 0 : index
    %218 = vector.load %arg8[%c0_48, %c0_49, %c0_50] : memref<1x8x32xf32, #tpu.memory_space<vmem>>, vector<1x8x32xf32>
    %219 = vector.shape_cast %218 : vector<1x8x32xf32> to vector<8x32xf32>
    %220 = vector.shape_cast %217 : vector<8x32xf32> to vector<1x8x32xf32>
    tpu.vector_store %arg8[%c0_48, %c0_49, %c0_50], %220 {strides = array<i32>} : memref<1x8x32xf32, #tpu.memory_space<vmem>>, vector<1x8x32xf32>,
    return
  }
  func.func @transform_0(%arg0: i32) -> (i32, i32, i32) {
    %c0_i32 = arith.constant 0 : i32
    %c0_i32_0 = arith.constant 0 : i32
    %c0_i32_1 = arith.constant 0 : i32
    return %arg0, %c0_i32, %c0_i32_0 : i32, i32, i32
  }
  func.func @transform_1(%arg0: i32) -> (i32, i32) {
    %c0_i32 = arith.constant 0 : i32
    %c0_i32_0 = arith.constant 0 : i32
    %c0_i32_1 = arith.constant 0 : i32
    return %c0_i32, %c0_i32_0 : i32, i32
  }
  func.func @transform_2(%arg0: i32) -> (i32, i32) {
    %c0_i32 = arith.constant 0 : i32
    %c0_i32_0 = arith.constant 0 : i32
    %c0_i32_1 = arith.constant 0 : i32
    return %c0_i32, %c0_i32_0 : i32, i32
  }
  func.func @transform_3(%arg0: i32) -> (i32, i32) {
    %c0_i32 = arith.constant 0 : i32
    %c0_i32_0 = arith.constant 0 : i32
    %c0_i32_1 = arith.constant 0 : i32
    return %c0_i32, %c0_i32_0 : i32, i32
  }
  func.func @transform_4(%arg0: i32) -> (i32, i32) {
    %c0_i32 = arith.constant 0 : i32
    %c0_i32_0 = arith.constant 0 : i32
    %c0_i32_1 = arith.constant 0 : i32
    return %c0_i32, %c0_i32_0 : i32, i32
  }
  func.func @transform_5(%arg0: i32) -> (i32, i32) {
    %c0_i32 = arith.constant 0 : i32
    %c0_i32_0 = arith.constant 0 : i32
    %c0_i32_1 = arith.constant 0 : i32
    return %c0_i32, %c0_i32_0 : i32, i32
  }
  func.func @transform_6(%arg0: i32) -> (i32, i32) {
    %c0_i32 = arith.constant 0 : i32
    %c0_i32_0 = arith.constant 0 : i32
    %c0_i32_1 = arith.constant 0 : i32
    return %c0_i32, %c0_i32_0 : i32, i32
  }
  func.func @transform_7(%arg0: i32) -> (i32, i32, i32) {
    %c0_i32 = arith.constant 0 : i32
    %c0_i32_0 = arith.constant 0 : i32
    %c0_i32_1 = arith.constant 0 : i32
    return %arg0, %c0_i32, %c0_i32_0 : i32, i32, i32
  }
}

</mosaic_0001>

<bundles_post_ra>
// kernel: tpu_custom_call.1
= control target key start
LH: loop header
LB: loop body
LE: loop exit
PB: predicated region body
PF: predicated region fallthrough
CT: control target
= control target key end

     0   :  { %12 = vsyncpa [#allocation3], 0  ;;  %s3607_s0 = inlined_call_operand.hbm [shape: f32[2,8,32], index: 0, kind: input, shape index: {}]   ;;  %s3608_s1 = inlined_call_operand.hbm [shape: f32[32,32], index: 1, kind: input, shape index: {}]   ;;  %s3609_s2 = inlined_call_operand.vmem [shape: f32[1,32], index: 2, kind: input, shape index: {}]   ;;  %s3610_s3 = inlined_call_operand.hbm [shape: f32[32,32], index: 3, kind: input, shape index: {}]   ;;  %s3611_s4 = inlined_call_operand.vmem [shape: f32[1,32], index: 4, kind: input, shape index: {}]   ;;  %s3612_s5 = inlined_call_operand.hbm [shape: f32[32,32], index: 5, kind: input, shape index: {}]   ;;  %s3613_s6 = inlined_call_operand.vmem [shape: f32[1,32], index: 6, kind: input, shape index: {}]   ;;  %s3614_s7 = inlined_call_operand.hbm [shape: f32[2,8,32], index: 7, kind: output, shape index: {}]  }
   0x1   :  { %14 = vsyncpa [#allocation3 + $0x1], 0 }
   0x2   :  { %15 = vsyncpa [#allocation6], 0 }
   0x3   :  { %16 = vsyncpa [#allocation9], 0 }
   0x4   :  { %17 = vsyncpa [#allocation4], 0 }
   0x5   :  { %19 = vsyncpa [#allocation4 + $0x1], 0  ;;  %s3114_s24 = smov 0   ;;  %s3116_s25 = smov 0  }
   0x6   :  { %s3118_s26 = smov 0   ;;  %s3120_s27 = smov 0  }
   0x7 LB: > { %s3135_s28 = sadd.s32 4294967295, %s3052_s27   ;;  %s2291_s29 = sadd.s32 4294967294, %s3052_s27   ;;  %s3052_s27 = sphi %s3120_s27, %s3640_s27   ;;  %s3048_s26 = sphi %s3118_s26, %s3639_s26   ;;  %s3044_s25 = sphi %s3116_s25, %s3638_s25   ;;  %s3040_s24 = sphi %s3114_s24, %s3637_s24  }
   0x8   : > { %p45_p0 = scmp.ne.s32.totalorder %s3044_s25, %s3040_s24  ;;  %p3615_p1 = scmp.eq.s32.totalorder %s3135_s28, 0 }
   0x9   : > { %p201_p3 = scmp.eq.s32.totalorder %s2291_s29, 1  ;;  %p2292_p5 = scmp.ge.s32.totalorder %s3052_s27, 1 }
   0xa   : > { %p3144_p4 = por %p3615_p1, %p45_p0  ;;  %p208_p7 = scmp.lt.s32.totalorder %s3052_s27, 3 }
   0xb   : > { %p3149_p6 = por %p201_p3, %p45_p0  ;;  %s3054_s10 = smov [#allocation5]  }
   0xc   : > { %s3619_s30 = scalar_select %p3144_p4, 1, 0 }
   0xd   : > { %s3620_s8 = scalar_select %p3149_p6, 1, 0 }
   0xe   : > { %p3154_p8 = pnand %p2292_p5, %p208_p7  ;;  %s220_s11 = sshll.u32 %s3054_s10, 4  ;;  %s3158_s11 = int_to_ptr.vmem [resolvable:$true] %s220_s11 }
   0xf   : > { %3621 = sst [smem:[#allocation15_spill]] %s3620_s8  ;;  %s3055_s13 = smov [#allocation7]  }
  0x10   : > { %s3622_s9 = scalar_select %p3154_p8, 1, 0 }
  0x11   : > { %p2756_p9 = pneg %p3154_p8  ;;  %s236_s14 = sshll.u32 %s3055_s13, 4  ;;  %s3169_s14 = int_to_ptr.vmem [resolvable:$true] %s236_s14 }
  0x12   : > { %s3056_s15 = smov [#allocation8]   ;;  %s2864_s19 = scalar_lea.hbm %s3608_s1, 512 }
  0x13   : > { %p3165_p11 = pnand %p2756_p9, %p3615_p1  ;;  %s3171_s16 = sshll.u32 %s3056_s15, 4  ;;  %s253_s16 = int_to_ptr.vmem [resolvable:$true] %s3171_s16 }
  0x14   : > { %p2865_p12 = scmp.ne.s32.totalorder %s3608_s1, %s2864_s19  ;;  %p2871_p5 = scmp.lt.u32.totalorder %s2864_s19, %s3608_s1 }
  0x15   : > { %p3181_p13 = pneg %p3165_p11 }
  0x17   : > { %p2867_p0 = pnand %p3181_p13, %p2865_p12 }
  0x19   : > { %p2868_p3 = pneg %p2867_p0 }
  0x1b   : > { %p2873_p7 = pnand %p2871_p5, %p2868_p3 }
  0x1d   : > { %2876 = shalt.err (!%p2873_p7)
}
  0x1e   : > { %s2877_s10 = scalar_lea.vmem %s3158_s11, 512  ;;  %p2885_p2 = scmp.lt.s32.totalorder %s3158_s11, %s3158_s11 }
  0x1f   : > { %p2878_p9 = scmp.ne.s32.totalorder %s3158_s11, %s2877_s10  ;;  %p2886_p6 = scmp.lt.s32.totalorder %s2877_s10, %s2877_s10 }
  0x21   : > { %p2880_p10 = pnand %p2878_p9, %p3181_p13  ;;  %p2887_p12 = por %p2886_p6, %p2885_p2 }
  0x23   : > { %p2881_p1 = pneg %p2880_p10 }
  0x25   : > { %p2888_p0 = pnand %p2887_p12, %p2881_p1 }
  0x27   : > { %2891 = shalt.err (!%p2888_p0)
}
  0x28   : > { %s3057_s13 = smov 128   ;;  %s3058_s15 = smov 8  }
  0x29   : > { %2759 = dma.hbm_to_vmem [thread:$0]  (!%p3165_p11), %s3608_s1, 512, %s3158_s11, [#allocation6], %s3057_s13, %s3057_s13, %s3058_s15  }
  0x2a   : > { %s2892_s21 = scalar_lea.hbm %s3610_s3, 512 }
  0x2b   : > { %p2893_p1 = scmp.ne.s32.totalorder %s3610_s3, %s2892_s21  ;;  %p2899_p10 = scmp.lt.u32.totalorder %s2892_s21, %s3610_s3 }
  0x2d   : > { %p2895_p2 = pnand %p2893_p1, %p3181_p13 }
  0x2f   : > { %p2896_p6 = pneg %p2895_p2 }
  0x31   : > { %p2901_p3 = pnand %p2899_p10, %p2896_p6 }
  0x33   : > { %2904 = shalt.err (!%p2901_p3)
}
  0x34   : > { %s2905_s11 = scalar_lea.vmem %s3169_s14, 512  ;;  %p2913_p12 = scmp.lt.s32.totalorder %s3169_s14, %s3169_s14 }
  0x35   : > { %p2906_p5 = scmp.ne.s32.totalorder %s3169_s14, %s2905_s11  ;;  %p2914_p0 = scmp.lt.s32.totalorder %s2905_s11, %s2905_s11 }
  0x37   : > { %p2908_p7 = pnand %p2906_p5, %p3181_p13  ;;  %p2915_p1 = por %p2914_p0, %p2913_p12 }
  0x39   : > { %p2909_p9 = pneg %p2908_p7 }
  0x3b   : > { %p2916_p2 = pnand %p2915_p1, %p2909_p9 }
  0x3d   : > { %2919 = shalt.err (!%p2916_p2)
}
  0x3e   : > { %2762 = dma.hbm_to_vmem [thread:$0]  (!%p3165_p11), %s3610_s3, 512, %s3169_s14, [#allocation6], %s3057_s13, %s3057_s13, %s3058_s15  }
  0x3f   : > { %s2920_s20 = scalar_lea.hbm %s3612_s5, 512 }
  0x40   : > { %p2921_p6 = scmp.ne.s32.totalorder %s3612_s5, %s2920_s20  ;;  %p2927_p5 = scmp.lt.u32.totalorder %s2920_s20, %s3612_s5 }
  0x42   : > { %p2923_p10 = pnand %p2921_p6, %p3181_p13 }
  0x44   : > { %p2924_p3 = pneg %p2923_p10 }
  0x46   : > { %p2929_p7 = pnand %p2927_p5, %p2924_p3 }
  0x48   : > { %2932 = shalt.err (!%p2929_p7)
}
  0x49   : > { %s2933_s11 = scalar_lea.vmem %s253_s16, 512  ;;  %p2941_p1 = scmp.lt.s32.totalorder %s253_s16, %s253_s16 }
  0x4a   : > { %p2934_p9 = scmp.ne.s32.totalorder %s253_s16, %s2933_s11  ;;  %p2942_p2 = scmp.lt.s32.totalorder %s2933_s11, %s2933_s11 }
  0x4c   : > { %p2936_p12 = pnand %p2934_p9, %p3181_p13  ;;  %p2943_p4 = por %p2942_p2, %p2941_p1 }
  0x4e   : > { %p2937_p0 = pneg %p2936_p12 }
  0x50   : > { %p2944_p8 = pnand %p2943_p4, %p2937_p0 }
  0x52   : > { %2947 = shalt.err (!%p2944_p8)
}
  0x53   : > { %2765 = dma.hbm_to_vmem [thread:$0]  (!%p3165_p11), %s3612_s5, 512, %s253_s16, [#allocation9], %s3057_s13, %s3057_s13, %s3058_s15  }
  0x54   : > { %s3254_s22 = sadd.s32 1, %s3052_s27   ;;  %s32_s17 = sadd.s32 1, %s3048_s26 }
  0x55   : > { %s29_s12 = ssub.s32 %s3052_s27, %s3254_s22  ;;  %p39_p8 = scmp.ne.s32.totalorder %s3048_s26, %s3044_s25 }
  0x56   : > { %p30_p4 = scmp.eq.s32.totalorder %s29_s12, 0  ;;  %p40_p13 = scmp.eq.s32.totalorder %s3052_s27, 0 }
  0x57   : > { %p2777_p6 = scmp.lt.s32.totalorder %s3052_s27, 2  ;;  %p3625_p3 = scmp.eq.s32.totalorder %s3135_s28, 1 }
  0x58   : > { %s3264_s18 = scalar_select %p30_p4, %s3048_s26, %s32_s17  }
  0x59   : > { %p41_p10 = por %p40_p13, %p39_p8  ;;  %p3268_p5 = por %p3625_p3, %p39_p8 }
  0x5a   : > { %s269_s20 = sand.u32 1, %s3048_s26   ;;  %s2298_s21 = sshll.u32 %s3052_s27, 7 }
  0x5b   : > { %s2297_s16 = sshll.u32 %s269_s20, 3  ;;  %s3277_s23 = scalar_lea.hbm %s3607_s0, %s2298_s21 }
  0x5c   : > { %s273_s29 = scalar_lea.vmem [#allocation2], %s2297_s16  ;;  %p3279_p11 = pnand %p2777_p6, %p41_p10 }
  0x5d   : > { %s280_s10 = sshll.u32 %s273_s29, 4  ;;  %s270_s14 = scalar_lea.sflag [#allocation3], %s269_s20  ;;  %s3283_s10 = int_to_ptr.vmem [resolvable:$true] %s280_s10 }
  0x5e   : > { %s2948_s8 = scalar_lea.hbm %s3277_s23, 128  ;;  %p2950_p9 = pneg %p3279_p11 }
  0x5f   : > { %p2949_p7 = scmp.ne.s32.totalorder %s3277_s23, %s2948_s8  ;;  %s2953_s21 = scalar_lea.hbm %s3607_s0, 256 }
  0x60   : > { %p2954_p1 = scmp.lt.u32.totalorder %s3277_s23, %s3607_s0  ;;  %p2955_p2 = scmp.lt.u32.totalorder %s2953_s21, %s2948_s8 }
  0x61   : > { %p2951_p12 = pnand %p2950_p9, %p2949_p7  ;;  %p2957_p8 = scmp.lt.u32.totalorder %s2948_s8, %s3277_s23 }
  0x62   : > { %p2956_p4 = por %p2955_p2, %p2954_p1 }
  0x63   : > { %p2952_p0 = pneg %p2951_p12 }
  0x64   : > { %p2958_p13 = por %p2957_p8, %p2956_p4 }
  0x66   : > { %p2959_p6 = pnand %p2958_p13, %p2952_p0 }
  0x68   : > { %2962 = shalt.err (!%p2959_p6)
}
  0x69   : > { %s2963_s20 = scalar_lea.vmem %s3283_s10, 128  ;;  %s3059_s15 = smov [#allocation2]  }
  0x6a   : > { %p2964_p10 = scmp.ne.s32.totalorder %s3283_s10, %s2963_s20  ;;  %s2968_s29 = sshll.u32 %s3059_s15, 4  ;;  %s2969_s29 = int_to_ptr.vmem [resolvable:$false] %s2968_s29 }
  0x6b   : > { %s2970_s12 = scalar_lea.vmem %s2969_s29, 256  ;;  %p2971_p12 = scmp.lt.s32.totalorder %s3283_s10, %s2969_s29 }
  0x6c   : > { %p2966_p3 = pnand %p2964_p10, %p2950_p9  ;;  %p2972_p1 = scmp.lt.s32.totalorder %s2970_s12, %s2963_s20 }
  0x6e   : > { %p2967_p7 = pneg %p2966_p3  ;;  %p2973_p2 = por %p2972_p1, %p2971_p12 }
  0x70   : > { %p2974_p4 = pnand %p2973_p2, %p2967_p7 }
  0x72   : > { %2977 = shalt.err (!%p2974_p4)
}
  0x73   : > { %2769 = dma.hbm_to_vmem [thread:$0]  (!%p3279_p11), %s3277_s23, 128, %s3283_s10, %s270_s14  }
  0x74   : > { %p3628_p0 = scmp.ne.s32.totalorder %s3622_s9, 0 }
  0x75   : > { %s3313_s8 = sand.u32 (!%p3628_p0), 1, %s3044_s25   ;;  %p3629_p9 = scmp.ne.s32.totalorder (!%p3628_p0), %s3619_s30, 0 }
  0x76   : > { %289 = sbr.rel (%p3628_p0) target bundleno = 1672 (0x688), region = 48  ;;  %s2300_s17 = sshll.u32 (!%p3628_p0), %s3313_s8, 3 }
  0x77   : > { %s292_s21 = scalar_lea.sflag (!%p3628_p0), [#allocation3], %s3313_s8  ;;  %s295_s16 = scalar_lea.vmem (!%p3628_p0), [#allocation2], %s2300_s17 }
  0x7d   : > { %3023 = dma.done.wait (%p3629_p9), %s292_s21, 128  }
  0x7e   : > { %3025 = vsyncadd (%p3629_p9), %s292_s21, 4294967168  ;;  %p3630_p11 = scmp.eq.s32.totalorder %s3135_s28, 0 }
  0x80   : > { %3027 = dma.done.wait (%p3630_p11), [#allocation6], 1024   ;;  %p3631_p8 = pmov %p3630_p11 }
  0x82   : > { %3029 = vsyncadd (%p3631_p8), [#allocation6], 4294966272  ;;  %p3632_p13 = pmov %p3631_p8 }
  0x83   : > { %p3633_p6 = pmov %p3631_p8 }
  0x84   : > { %3031 = dma.done.wait (%p3632_p13), [#allocation9], 512  }
  0x85   : > { %3033 = vsyncadd (%p3633_p6), [#allocation9], 4294966784  ;;  %v3060_v0 = vmov 0.0|0.0   ;;  %vm3061_vm0 = vmmov 0   ;;  %v3062_v1 = vmov 0.0   ;;  %vm350_vm1 = vcmask 261120  }
  0x86   : > { %2600 = vmatprep.subr.bf16.mxu1 %v3060_v0  ;;  %2618 = vmatprep.subr.bf16.mxu0 %v3060_v0  ;;  %v339_v2 = vld [vmem:[#allocation5] sm:$0xff]  ;;  %v340_v3 = vld [vmem:[#allocation5 + $0x8] sm:$0xff]  ;;  %v341_v4 = vld [vmem:[#allocation5 + $0x10] sm:$0xff]  ;;  %s3063_s11 = smov 8   ;;  %s3064_s14 = smov 120   ;;  %vm1832_vm2 = vcmask 64512  }
  0x87   : > { %2410 = vmatprep.mubr.msk.f32.mxu1 %vm3061_vm0, %v3062_v1  ;;  %2443 = vmatprep.mubr.msk.f32.mxu0 %vm3061_vm0, %v3062_v1  ;;  %v355_v5 = vand.u32 4294901760, %v339_v2  ;;  %v358_v6 = vand.u32 4294901760, %v340_v3  ;;  %v342_v7 = vld [vmem:[#allocation5 + $0x18] sm:$0xff]  ;;  %v361_v8 = vand.u32 4294901760, %v341_v4  ;;  %v839_v37 = vld [vmem:[#allocation7] sm:$0xff]  ;;  %v840_v38 = vld [vmem:[#allocation7 + $0x8] sm:$0xff] }
  0x88   : > { %v338_v9 = vld [vmem:[%s295_s16] sm:$0xff]  ;;  %v364_v10 = vand.u32 4294901760, %v342_v7  ;;  %v851_v41 = vand.u32 4294901760, %v839_v37  ;;  %v854_v42 = vand.u32 4294901760, %v840_v38  ;;  %s3065_s13 = smov 16   ;;  %s3066_s20 = smov 112  }
  0x89   : > { %v352_v11 = vsel %vm350_vm1, %v338_v9, 0  ;;  %v2601_v12 = vpack.c.bf16 %v358_v6, %v355_v5  ;;  %v3338_v13 = vsub.f32 %v339_v2, %v355_v5  ;;  %v442_v14 = vsub.f32 %v340_v3, %v358_v6  ;;  %v841_v43 = vld [vmem:[#allocation7 + $0x10] sm:$0xff]  ;;  %v842_v44 = vld [vmem:[#allocation7 + $0x18] sm:$0xff]  ;;  %s3067_s15 = smov 24   ;;  %s3068_s29 = smov 104  }
  0x8a   : > { %v3340_v15 = vsub.f32 %v341_v4, %v361_v8  ;;  %v3342_v16 = vsub.f32 %v342_v7, %v364_v10  ;;  %v3344_v17 = vand.u32 4294901760, %v352_v11  ;;  %v2604_v18 = vpack.c.bf16 %v364_v10, %v361_v8  ;;  %s2309_s16 = sshll.u32 %s3135_s28, 7  ;;  %s337_s30 = scalar_lea.vmem [#allocation10], %s2300_s17 }
  0x8b   : > { %2602 = vmatpush3.bf16.msra.mxu1 %v2601_v12  ;;  %2620 = vmatpush3.bf16.msra.mxu0 %v2601_v12  ;;  %v436_v19 = vand.u32 4294901760, %v3338_v13  ;;  %v443_v20 = vand.u32 4294901760, %v442_v14  ;;  %v2613_v45 = vpack.c.bf16 %v442_v14, %v3338_v13  ;;  %v3376_v46 = vsub.f32 %v839_v37, %v851_v41  ;;  %s2192_s9 = sshll.u32 %s337_s30, 4  ;;  %s2179_s28 = scalar_lea.sflag [#allocation4], %s3313_s8  ;;  %s3564_s9 = int_to_ptr.vmem [resolvable:$true] %s2192_s9 }
  0x8c   : > { %v450_v21 = vand.u32 4294901760, %v3340_v15  ;;  %2603 = vmatprep.subr.bf16.mxu1 %v3060_v0  ;;  %2621 = vmatprep.subr.bf16.mxu0 %v3060_v0  ;;  %v3351_v22 = vsub.f32 %v352_v11, %v3344_v17  ;;  %v457_v23 = vand.u32 4294901760, %v3342_v16  ;;  %v3378_v47 = vsub.f32 %v840_v38, %v854_v42  ;;  %v2305_v11 = vld [vmem:[%s3609_s2] ss:$0 sm:$0xff]  ;;  %s2978_s17 = scalar_lea.vmem %s3564_s9, 128 }
  0x8d   : > { %v437_v24 = vsub.f32 %v3338_v13, %v436_v19  ;;  %v444_v25 = vsub.f32 %v442_v14, %v443_v20  ;;  %v2625_v31 = vpack.c.bf16 %v443_v20, %v436_v19  ;;  %v857_v48 = vand.u32 4294901760, %v841_v43  ;;  %v2306_v19 = vld [vmem:[%s3611_s4] ss:$0 sm:$0xff]  ;;  %p2979_p10 = scmp.ne.s32.totalorder %s3564_s9, %s2978_s17 }
  0x8e   : > { %v451_v26 = vsub.f32 %v3340_v15, %v450_v21  ;;  %v3357_v27 = vand.u32 4294901760, %v3351_v22  ;;  %v458_v28 = vsub.f32 %v3342_v16, %v457_v23  ;;  %v2628_v39 = vpack.c.bf16 %v457_v23, %v450_v21 }
  0x8f   : > { %2605 = vmatpush3.bf16.msra.mxu1 %v2604_v18  ;;  %2623 = vmatpush3.bf16.msra.mxu0 %v2604_v18  ;;  %v438_v29 = vand.u32 4294901760, %v437_v24  ;;  %v445_v30 = vand.u32 4294901760, %v444_v25  ;;  %v860_v49 = vand.u32 4294901760, %v842_v44  ;;  %v2616_v50 = vpack.c.bf16 %v3342_v16, %v3340_v15  ;;  %p2980_p3 = pnand %p2979_p10, %p3268_p5 }
  0x90   : > { %v426_v32 = vsub.f32 %v3351_v22, %v3357_v27  ;;  %2606 = vmatprep.subr.bf16.mxu1 %v3060_v0  ;;  %2624 = vmatprep.subr.bf16.mxu0 %v3060_v0  ;;  %v452_v34 = vand.u32 4294901760, %v451_v26  ;;  %v459_v35 = vand.u32 4294901760, %v458_v28  ;;  %v945_v51 = vsub.f32 %v841_v43, %v857_v48 }
  0x91   : > { %v2607_v33 = vpack.c.bf16 %v445_v30, %v438_v29  ;;  %v952_v52 = vsub.f32 %v842_v44, %v860_v49  ;;  %v932_v53 = vand.u32 4294901760, %v3376_v46  ;;  %v939_v54 = vand.u32 4294901760, %v3378_v47  ;;  %p2981_p7 = pneg %p2980_p3 }
  0x92   : > { %v3364_v36 = vand.u32 4294901760, %v426_v32  ;;  %2444 = vmatmul.mubr.f32.vlgmr.msra.gmra.mrb[0].mxu0 %v3357_v27  ;;  %v2610_v40 = vpack.c.bf16 %v459_v35, %v452_v34  ;;  %v2637_v55 = vpack.c.bf16 %v854_v42, %v851_v41  ;;  %v946_v58 = vand.u32 4294901760, %v945_v51 }
  0x93   : > { %2626 = vmatpush3.bf16.msra.mxu0 %v2625_v31  ;;  %2454 = vmatprep.mubr.msk.f32.mxu0 %vm3061_vm0, %v3062_v1  ;;  %v933_v56 = vsub.f32 %v3376_v46, %v932_v53  ;;  %v940_v57 = vsub.f32 %v3378_v47, %v939_v54  ;;  %v953_v59 = vand.u32 4294901760, %v952_v52  ;;  %v2640_v60 = vpack.c.bf16 %v860_v49, %v857_v48 }
  0x94   : > { %2411 = vmatmul.mubr.f32.vlgmr.msra.gmra.mrb[0].mxu1 %v3364_v36  ;;  %2627 = vmatprep.subr.bf16.mxu0 %v3060_v0  ;;  %v947_v63 = vsub.f32 %v945_v51, %v946_v58  ;;  %v2649_v7 = vpack.c.bf16 %v3378_v47, %v3376_v46  ;;  %v2652_v8 = vpack.c.bf16 %v952_v52, %v945_v51  ;;  %vm1858_vm3 = vcmask 7168  }
  0x95   : > { %2608 = vmatpush3.bf16.msra.mxu1 %v2607_v33  ;;  %2421 = vmatprep.mubr.msk.f32.mxu1 %vm3061_vm0, %v3062_v1  ;;  %v934_v61 = vand.u32 4294901760, %v933_v56  ;;  %v941_v62 = vand.u32 4294901760, %v940_v57  ;;  %v954_v2 = vsub.f32 %v952_v52, %v953_v59  ;;  %v2661_v9 = vpack.c.bf16 %v939_v54, %v932_v53 }
  0x96   : > { %2609 = vmatprep.subr.bf16.mxu1 %v3060_v0  ;;  %v948_v4 = vand.u32 4294901760, %v947_v63  ;;  %v2664_v10 = vpack.c.bf16 %v953_v59, %v946_v58  ;;  %vm1860_vm4 = vcmask 15360   ;;  %vm1862_vm5 = vcmask 23552  }
  0x97   : > { %2629 = vmatpush3.bf16.msra.mxu0 %v2628_v39  ;;  %v2643_v3 = vpack.c.bf16 %v941_v62, %v934_v61  ;;  %v955_v5 = vand.u32 4294901760, %v954_v2  ;;  %vm1865_vm6 = vcmask 31744   ;;  %vm2173_vm7 = vcmask 130048  }
  0x98   : > { %2630 = vmatprep.subr.bf16.mxu0 %v3060_v0  ;;  %vm2175_vm8 = vcmask 195584  }
  0x99   : > { %2611 = vmatpush3.bf16.msra.mxu1 %v2610_v40  ;;  %v2646_v6 = vpack.c.bf16 %v955_v5, %v948_v4 }
  0x9a   : > { %2612 = vmatprep.subr.bf16.mxu1 %v3060_v0  ;;  %2455 = vmatmul.mubr.f32.vlgmr.msra.gmra.mrb[0].mxu0 %v3344_v17 }
  0x9b   : > { %2632 = vmatpush3.bf16.msra.mxu0 %v2601_v12  ;;  %2465 = vmatprep.mubr.msk.f32.mxu0 %vm3061_vm0, %v3062_v1 }
  0x9c   : > { %2422 = vmatmul.mubr.f32.vlgmr.msra.gmra.mrb[0].mxu1 %v3344_v17  ;;  %2633 = vmatprep.subr.bf16.mxu0 %v3060_v0 }
  0x9d   : > { %2614 = vmatpush3.bf16.msra.mxu1 %v2613_v45  ;;  %2432 = vmatprep.mubr.msk.f32.mxu1 %vm3061_vm0, %v3062_v1 }
  0x9e   : > { %2615 = vmatprep.subr.bf16.mxu1 %v3060_v0 }
  0x9f   : > { %2635 = vmatpush3.bf16.msra.mxu0 %v2604_v18 }
  0xa0   : > { %2672 = vmatprep.subr.bf16.mxu0 %v3060_v0 }
  0xa1   : > { %2617 = vmatpush3.bf16.msra.mxu1 %v2616_v50 }
  0xa2   : > { %2636 = vmatprep.subr.bf16.mxu1 %v3060_v0  ;;  %2466 = vmatmul.mubr.f32.vlgmr.msra.gmra.mrb[0].mxu0 %v3344_v17 }
  0xa3   : > { %2542 = vmatprep.mubr.msk.f32.mxu0 %vm3061_vm0, %v3062_v1 }
  0xa4   : > { %2433 = vmatmul.mubr.f32.vlgmr.msra.gmra.mrb[0].mxu1 %v3351_v22 }
  0xa5   : > { %2638 = vmatpush3.bf16.msra.mxu1 %v2637_v55  ;;  %2476 = vmatprep.mubr.msk.f32.mxu1 %vm3061_vm0, %v3062_v1 }
  0xa6   : > { %2639 = vmatprep.subr.bf16.mxu1 %v3060_v0 }
  0xa9   : > { %2641 = vmatpush3.bf16.msra.mxu1 %v2640_v60 }
  0xaa   : > { %2642 = vmatprep.subr.bf16.mxu1 %v3060_v0 }
  0xac   : > { %2477 = vmatmul.mubr.f32.vlgmr.msra.gmra.mrb[2].mxu1 %v3364_v36 }
  0xad   : > { %2644 = vmatpush3.bf16.msra.mxu1 %v2643_v3  ;;  %2487 = vmatprep.mubr.msk.f32.mxu1 %vm3061_vm0, %v3062_v1 }
  0xae   : > { %2645 = vmatprep.subr.bf16.mxu1 %v3060_v0 }
  0xb1   : > { %2647 = vmatpush3.bf16.msra.mxu1 %v2646_v6 }
  0xb2   : > { %2648 = vmatprep.subr.bf16.mxu1 %v3060_v0 }
  0xb4   : > { %2488 = vmatmul.mubr.f32.vlgmr.msra.gmra.mrb[2].mxu1 %v3344_v17 }
  0xb5   : > { %2650 = vmatpush3.bf16.msra.mxu1 %v2649_v7  ;;  %2498 = vmatprep.mubr.msk.f32.mxu1 %vm3061_vm0, %v3062_v1 }
  0xb6   : > { %2651 = vmatprep.subr.bf16.mxu1 %v3060_v0 }
  0xb9   : > { %2653 = vmatpush3.bf16.msra.mxu1 %v2652_v8 }
  0xba   : > { %2654 = vmatprep.subr.bf16.mxu1 %v3060_v0 }
  0xbc   : > { %2499 = vmatmul.mubr.f32.vlgmr.msra.gmra.mrb[2].mxu1 %v3351_v22 }
  0xbd   : > { %2656 = vmatpush3.bf16.msra.mxu1 %v2637_v55  ;;  %2509 = vmatprep.mubr.msk.f32.mxu1 %vm3061_vm0, %v3062_v1 }
  0xbe   : > { %2657 = vmatprep.subr.bf16.mxu1 %v3060_v0 }
  0xc1   : > { %2659 = vmatpush3.bf16.msra.mxu1 %v2640_v60 }
  0xc2   : > { %2660 = vmatprep.subr.bf16.mxu1 %v3060_v0 }
  0xc4   : > { %2510 = vmatmul.mubr.f32.vlgmr.msra.gmra.mrb[2].mxu1 %v3357_v27 }
  0xc5   : > { %2662 = vmatpush3.bf16.msra.mxu1 %v2661_v9  ;;  %2520 = vmatprep.mubr.msk.f32.mxu1 %vm3061_vm0, %v3062_v1 }
  0xc6   : > { %2663 = vmatprep.subr.bf16.mxu1 %v3060_v0 }
  0xc9   : > { %2665 = vmatpush3.bf16.msra.mxu1 %v2664_v10 }
  0xca   : > { %2666 = vmatprep.subr.bf16.mxu1 %v3060_v0 }
  0xcc   : > { %2521 = vmatmul.mubr.f32.vlgmr.msra.gmra.mrb[2].mxu1 %v3344_v17 }
  0xcd   : > { %2668 = vmatpush3.bf16.msra.mxu1 %v2637_v55  ;;  %2531 = vmatprep.mubr.msk.f32.mxu1 %vm3061_vm0, %v3062_v1 }
  0xce   : > { %2669 = vmatprep.subr.bf16.mxu1 %v3060_v0 }
  0xd1   : > { %2671 = vmatpush3.bf16.msra.mxu1 %v2640_v60 }
  0xd4   : > { %2532 = vmatmul.mubr.f32.vlgmr.msra.gmra.mrb[2].mxu1 %v3344_v17 }
 0x175   : > { %v835_v12 = vpop.f32.mrb[0].mxu0 }
 0x176   : > { %v2467_v13 = vpop.f32.mrb[1].mxu0 }
 0x177   : > { %v600_v14 = vpop.f32.mrb[0].mxu1 }
 0x178   : > { %v2708_v15 = vadd.f32 %v2305_v11, %v600_v14  ;;  %v2434_v16 = vpop.f32.mrb[1].mxu1  ;;  %v1335_v14 = vld [vmem:[#allocation8] sm:$0xff] }
 0x179   : > { %v1337_v16 = vld [vmem:[#allocation8 + $0x10] sm:$0xff] }
 0x17a   : > { %v2709_v18 = vadd.f32 %v2708_v15, %v835_v12  ;;  %v1336_v15 = vld [vmem:[#allocation8 + $0x8] sm:$0xff] }
 0x1a7   : > { %v1331_v20 = vpop.f32.mrb[2].mxu1 }
 0x1a8   : > { %v2710_v21 = vadd.f32 %v2306_v19, %v1331_v20  ;;  %v2533_v23 = vpop.f32.mrb[3].mxu1  ;;  %v1350_v19 = vand.u32 4294901760, %v1336_v15  ;;  %v1338_v20 = vld [vmem:[#allocation8 + $0x18] sm:$0xff] }
 0x1a9   : > { %v1356_v23 = vand.u32 4294901760, %v1338_v20 }
 0x1aa   : > { %1914 = vrot.lane.b32.xlu1 %v2710_v21, %s3063_s11  ;;  %1837 = vrot.lane.b32.xlu0 %v2710_v21, %s3064_s14  ;;  %v1831_v24 = vmul.f32 %v2710_v21, %v2709_v18 }
 0x1ac   : > { %v1833_v25 = vsel %vm1832_vm2, %v1831_v24, 0.0 }
 0x1ae   : > { %1998 = vrot.lane.b32.xlu1 %v2710_v21, %s3065_s13 }
 0x1b2   : > { %1844 = vrot.lane.b32.xlu1 %v2710_v21, %s3066_s20 }
 0x1b6   : > { %2079 = vrot.lane.b32.xlu1 %v2710_v21, %s3067_s15 }
 0x1ba   : > { %1851 = vrot.lane.b32.xlu1 %v2710_v21, %s3068_s29  ;;  %v1353_v21 = vand.u32 4294901760, %v1337_v16 }
 0x1be   : > { %1926 = vrot.lane.b32.xlu1 %v1831_v24, %s3064_s14 }
 0x1c2   : > { %2015 = vrot.lane.b32.xlu1 %v1831_v24, %s3066_s20 }
 0x1c9   : > { %1834 = vadd.xlane.f32.xlu0 %v1833_v25 }
 0x21c   : > { %v1915_v26 = vpop.permute.xlu1 %1914  ;;  %v1838_v28 = vpop.permute.xlu0 %1837 }
 0x21d   : > { %v1917_v29 = vmul.f32 %v2709_v18, %v1915_v26  ;;  %v1840_v30 = vmul.f32 %v2709_v18, %v1838_v28  ;;  %v1434_v26 = vsub.f32 %v1336_v15, %v1350_v19  ;;  %v1441_v28 = vsub.f32 %v1337_v16, %v1353_v21 }
 0x21e   : > { %v3069_v15 = vmov 1   ;;  %v3070_v16 = vmov 0  }
 0x21f   : > { %1933 = vrot.lane.b32.xlu1 %v1840_v30, %s3064_s14  ;;  %1919 = vrot.lane.b32.xlu0 %v1917_v29, %s3064_s14  ;;  %v1841_v42 = vsel %vm1832_vm2, %v1840_v30, 0.0 }
 0x220   : > { %v1999_v31 = vpop.permute.xlu1 %1998  ;;  %2833 = vset.pattern.permute.xlu1 %v3069_v15  ;;  %2832 = vset.pattern.permute.xlu0 %v3070_v16 }
 0x221   : > { %v2001_v32 = vmul.f32 %v2709_v18, %v1999_v31 }
 0x223   : > { %2003 = vrot.lane.b32.xlu1 %v2001_v32, %s3066_s20 }
 0x224   : > { %v1845_v33 = vpop.permute.xlu1 %1844 }
 0x225   : > { %v1847_v34 = vmul.f32 %v2709_v18, %v1845_v33  ;;  %v1442_v33 = vand.u32 4294901760, %v1441_v28 }
 0x227   : > { %2009 = vrot.lane.b32.xlu1 %v1917_v29, %s3066_s20  ;;  %1940 = vrot.lane.b32.xlu0 %v1847_v34, %s3064_s14  ;;  %v1848_v41 = vsel %vm1832_vm2, %v1847_v34, 0.0 }
 0x228   : > { %v2080_v35 = vpop.permute.xlu1 %2079 }
 0x229   : > { %v2082_v37 = vmul.f32 %v2709_v18, %v2080_v35 }
 0x22b   : > { %2090 = vrot.lane.b32.xlu1 %v2001_v32, %s3068_s29  ;;  %2084 = vrot.lane.b32.xlu0 %v2082_v37, %s3068_s29  ;;  %v1435_v32 = vand.u32 4294901760, %v1434_v26 }
 0x22c   : > { %v1852_v38 = vpop.permute.xlu1 %1851 }
 0x22d   : > { %v1854_v39 = vmul.f32 %v2709_v18, %v1852_v38  ;;  %v1347_v18 = vand.u32 4294901760, %v1335_v14  ;;  %v1436_v37 = vsub.f32 %v1434_v26, %v1435_v32  ;;  %v1443_v38 = vsub.f32 %v1441_v28, %v1442_v33 }
 0x22f   : > { %2096 = vrot.lane.b32.xlu1 %v1917_v29, %s3068_s29  ;;  %2021 = vrot.lane.b32.xlu0 %v1840_v30, %s3066_s20  ;;  %v1855_v43 = vsel %vm1832_vm2, %v1854_v39, 0.0  ;;  %v1427_v25 = vsub.f32 %v1335_v14, %v1347_v18  ;;  %v1448_v29 = vsub.f32 %v1338_v20, %v1356_v23  ;;  %v3482_v30 = vpack.c.bf16 %v1356_v23, %v1353_v21 }
 0x230   : > { %v1927_v40 = vpop.permute.xlu1 %1926 }
 0x231   : > { %v1929_v44 = vsel %vm1832_vm2, %v1927_v40, 0.0  ;;  %v1428_v31 = vand.u32 4294901760, %v1427_v25  ;;  %v1449_v34 = vand.u32 4294901760, %v1448_v29 }
 0x233   : > { %2102 = vrot.lane.b32.xlu0 %v1831_v24, %s3068_s29  ;;  %v3479_v24 = vpack.c.bf16 %v1350_v19, %v1347_v18  ;;  %v1429_v35 = vsub.f32 %v1427_v25, %v1428_v31  ;;  %v1450_v39 = vsub.f32 %v1448_v29, %v1449_v34 }
 0x234   : > { %v2016_v45 = vpop.permute.xlu1 %2015 }
 0x235   : > { %v2018_v46 = vsel %vm1832_vm2, %v2016_v45, 0.0  ;;  %2674 = vmatpush3.bf16.msra.mxu0 %v3479_v24  ;;  %v1430_v40 = vand.u32 4294901760, %v1429_v35 }
 0x236   : > { %2675 = vmatprep.subr.bf16.mxu0 %v3060_v0 }
 0x239   : > { %2677 = vmatpush3.bf16.msra.mxu0 %v3482_v30 }
 0x23a   : > { %2678 = vmatprep.subr.bf16.mxu0 %v3060_v0 }
 0x23c   : > { %2543 = vmatmul.mubr.f32.vlgmr.msra.gmra.mrb[2].mxu0 %v3364_v36 }
 0x23d   : > { %2553 = vmatprep.mubr.msk.f32.mxu0 %vm3061_vm0, %v3062_v1 }
 0x252   : > { %1849 = vadd.xlane.f32.xlu0 %v1848_v41  ;;  %v1437_v41 = vand.u32 4294901760, %v1436_v37 }
 0x253   : > { %1842 = vadd.xlane.f32.xlu1 %v1841_v42  ;;  %v1444_v42 = vand.u32 4294901760, %v1443_v38 }
 0x256   : > { %1856 = vadd.xlane.f32.xlu0 %v1855_v43  ;;  %v1835_v47 = vpop.xlane.xlu0 %1834  ;;  %v1451_v43 = vand.u32 4294901760, %v1450_v39 }
 0x257   : > { %1930 = vadd.xlane.f32.xlu1 %v1929_v44  ;;  %v2679_v44 = vpack.c.bf16 %v1437_v41, %v1430_v40  ;;  %v3071_v40 = vmov 2   ;;  %v3072_v41 = vmov 3  }
 0x258   : > { %v2682_v45 = vpack.c.bf16 %v1451_v43, %v1444_v42 }
 0x259   : > { %2680 = vmatpush3.bf16.msra.mxu0 %v2679_v44 }
 0x25a   : > { %2681 = vmatprep.subr.bf16.mxu0 %v3060_v0 }
 0x25b   : > { %2019 = vadd.xlane.f32.xlu1 %v2018_v46 }
 0x25d   : > { %2683 = vmatpush3.bf16.msra.mxu0 %v2682_v45 }
 0x25e   : > { %2684 = vmatprep.subr.bf16.mxu0 %v3060_v0 }
 0x260   : > { %2554 = vmatmul.mubr.f32.vlgmr.msra.gmra.mrb[2].mxu0 %v3344_v17 }
 0x261   : > { %2564 = vmatprep.mubr.msk.f32.mxu0 %vm3061_vm0, %v3062_v1 }
 0x291   : > { %v1934_v48 = vpop.permute.xlu1 %1933  ;;  %v1920_v49 = vpop.permute.xlu0 %1919 }
 0x292   : > { %v1922_v50 = vsel %vm1832_vm2, %v1920_v49, 0.0  ;;  %v1936_v52 = vsel %vm1832_vm2, %v1934_v48, 0.0  ;;  %v2688_v48 = vpack.c.bf16 %v1448_v29, %v1441_v28 }
 0x293   : > { %1923 = vadd.xlane.f32.xlu1 %v1922_v50 }
 0x295   : > { %v2004_v51 = vpop.permute.xlu1 %2003 }
 0x296   : > { %v2006_v54 = vsel %vm1832_vm2, %v2004_v51, 0.0  ;;  %v2697_v51 = vpack.c.bf16 %v1435_v32, %v1428_v31 }
 0x297   : > { %1937 = vadd.xlane.f32.xlu1 %v1936_v52 }
 0x299   : > { %v1941_v53 = vpop.permute.xlu0 %1940  ;;  %v2010_v55 = vpop.permute.xlu1 %2009 }
 0x29a   : > { %v2012_v57 = vsel %vm1832_vm2, %v2010_v55, 0.0  ;;  %v1943_v59 = vsel %vm1832_vm2, %v1941_v53, 0.0  ;;  %v2700_v53 = vpack.c.bf16 %v1449_v34, %v1442_v33 }
 0x29b   : > { %2007 = vadd.xlane.f32.xlu1 %v2006_v54 }
 0x29d   : > { %v2085_v56 = vpop.permute.xlu0 %2084  ;;  %v2091_v63 = vpop.permute.xlu1 %2090 }
 0x29e   : > { %v2087_v61 = vsel %vm1832_vm2, %v2085_v56, 0.0  ;;  %v2093_v2 = vsel %vm1832_vm2, %v2091_v63, 0.0 }
 0x29f   : > { %2013 = vadd.xlane.f32.xlu1 %v2012_v57 }
 0x2a1   : > { %v2022_v58 = vpop.permute.xlu0 %2021  ;;  %v2097_v4 = vpop.permute.xlu1 %2096 }
 0x2a2   : > { %v2024_v3 = vsel %vm1832_vm2, %v2022_v58, 0.0  ;;  %v2099_v5 = vsel %vm1832_vm2, %v2097_v4, 0.0 }
 0x2a3   : > { %1944 = vadd.xlane.f32.xlu1 %v1943_v59 }
 0x2a5   : > { %v2103_v60 = vpop.permute.xlu0 %2102 }
 0x2a6   : > { %v2105_v62 = vsel %vm1832_vm2, %v2103_v60, 0.0 }
 0x2a7   : > { %2088 = vadd.xlane.f32.xlu1 %v2087_v61  ;;  %2106 = vadd.xlane.f32.xlu0 %v2105_v62 }
 0x2ab   : > { %2094 = vadd.xlane.f32.xlu1 %v2093_v2 }
 0x2af   : > { %2025 = vadd.xlane.f32.xlu1 %v2024_v3 }
 0x2b3   : > { %2100 = vadd.xlane.f32.xlu1 %v2099_v5 }
 0x2df   : > { %v1850_v6 = vpop.xlane.xlu0 %1849 }
 0x2e0   : > { %v1843_v7 = vpop.xlane.xlu1 %1842 }
 0x2e1   : > { %v1859_v8 = vsel %vm1858_vm3, %v1835_v47, %v1843_v7  ;;  %v2685_v47 = vpack.c.bf16 %v1434_v26, %v1427_v25 }
 0x2e2   : > { %v1861_v9 = vsel %vm1860_vm4, %v1859_v8, %v1850_v6 }
 0x2e3   : > { %v1857_v10 = vpop.xlane.xlu0 %1856  ;;  %2686 = vmatpush3.bf16.msra.mxu0 %v2685_v47 }
 0x2e4   : > { %v1863_v11 = vsel %vm1862_vm5, %v1861_v9, %v1857_v10  ;;  %v1931_v46 = vpop.xlane.xlu1 %1930  ;;  %2687 = vmatprep.subr.bf16.mxu0 %v3060_v0 }
 0x2e5   : > { %v3475_v12 = vmul.f32 0.35355338, %v1863_v11 }
 0x2e7   : > { %v1866_v13 = vsel %vm1865_vm6, %v3475_v12, -inf  ;;  %2689 = vmatpush3.bf16.msra.mxu0 %v2688_v48 }
 0x2e8   : > { %1867 = vmax.xlane.f32.xlu1 %v1866_v13  ;;  %v2020_v36 = vpop.xlane.xlu1 %2019  ;;  %2690 = vmatprep.subr.bf16.mxu0 %v3060_v0 }
 0x2ea   : > { %2565 = vmatmul.mubr.f32.vlgmr.msra.gmra.mrb[2].mxu0 %v3351_v22 }
 0x2eb   : > { %2692 = vmatpush3.bf16.msra.mxu0 %v3479_v24  ;;  %2575 = vmatprep.mubr.msk.f32.mxu0 %vm3061_vm0, %v3062_v1 }
 0x2ec   : > { %2693 = vmatprep.subr.bf16.mxu0 %v3060_v0 }
 0x2ef   : > { %2695 = vmatpush3.bf16.msra.mxu0 %v3482_v30 }
 0x2f0   : > { %2696 = vmatprep.subr.bf16.mxu0 %v3060_v0 }
 0x2f2   : > { %2576 = vmatmul.mubr.f32.vlgmr.msra.gmra.mrb[2].mxu0 %v3357_v27 }
 0x2f3   : > { %2698 = vmatpush3.bf16.msra.mxu0 %v2697_v51  ;;  %2586 = vmatprep.mubr.msk.f32.mxu0 %vm3061_vm0, %v3062_v1 }
 0x2f4   : > { %2699 = vmatprep.subr.bf16.mxu0 %v3060_v0 }
 0x2f7   : > { %2701 = vmatpush3.bf16.msra.mxu0 %v2700_v53 }
 0x2f8   : > { %2702 = vmatprep.subr.bf16.mxu0 %v3060_v0 }
 0x2fa   : > { %2587 = vmatmul.mubr.f32.vlgmr.msra.gmra.mrb[2].mxu0 %v3344_v17 }
 0x2fb   : > { %2704 = vmatpush3.bf16.msra.mxu0 %v3479_v24  ;;  %2597 = vmatprep.mubr.msk.f32.mxu0 %vm3061_vm0, %v3062_v1 }
 0x2fc   : > { %2705 = vmatprep.subr.bf16.mxu0 %v3060_v0 }
 0x2ff   : > { %2707 = vmatpush3.bf16.msra.mxu0 %v3482_v30 }
 0x302   : > { %2598 = vmatmul.mubr.f32.vlgmr.msra.gmra.mrb[2].mxu0 %v3344_v17 }
 0x320   : > { %v1924_v49 = vpop.xlane.xlu1 %1923 }
 0x321   : > { %v1946_v54 = vsel %vm1858_vm3, %v1924_v49, %v1931_v46 }
 0x324   : > { %v1938_v50 = vpop.xlane.xlu1 %1937 }
 0x325   : > { %v1947_v55 = vsel %vm1860_vm4, %v1946_v54, %v1938_v50  ;;  %v2307_v50 = vld [vmem:[%s3613_s6] ss:$0 sm:$0xff] }
 0x328   : > { %v2008_v52 = vpop.xlane.xlu1 %2007 }
 0x32c   : > { %v2014_v22 = vpop.xlane.xlu1 %2013 }
 0x32d   : > { %v2027_v61 = vsel %vm1858_vm3, %v2008_v52, %v2014_v22 }
 0x32e   : > { %v2028_v62 = vsel %vm1860_vm4, %v2027_v61, %v2020_v36 }
 0x330   : > { %v1945_v56 = vpop.xlane.xlu1 %1944 }
 0x331   : > { %v1948_v57 = vsel %vm1862_vm5, %v1947_v55, %v1945_v56 }
 0x332   : > { %v1949_v58 = vmul.f32 0.35355338, %v1948_v57 }
 0x334   : > { %v2089_v27 = vpop.xlane.xlu1 %2088  ;;  %v1950_v59 = vsel %vm1865_vm6, %v1949_v58, -inf  ;;  %v2107_v0 = vpop.xlane.xlu0 %2106 }
 0x335   : > { %1951 = vmax.xlane.f32.xlu1 %v1950_v59 }
 0x338   : > { %v2095_v60 = vpop.xlane.xlu1 %2094 }
 0x339   : > { %v2108_v1 = vsel %vm1858_vm3, %v2089_v27, %v2095_v60 }
 0x33c   : > { %v2026_v63 = vpop.xlane.xlu1 %2025 }
 0x33d   : > { %v2029_v2 = vsel %vm1862_vm5, %v2028_v62, %v2026_v63 }
 0x33e   : > { %v2030_v3 = vmul.f32 0.35355338, %v2029_v2 }
 0x340   : > { %v2101_v4 = vpop.xlane.xlu1 %2100  ;;  %v2031_v5 = vsel %vm1865_vm6, %v2030_v3, -inf }
 0x341   : > { %v2109_v6 = vsel %vm1860_vm4, %v2108_v1, %v2101_v4  ;;  %2032 = vmax.xlane.f32.xlu0 %v2031_v5 }
 0x342   : > { %v2110_v7 = vsel %vm1862_vm5, %v2109_v6, %v2107_v0 }
 0x343   : > { %v2111_v8 = vmul.f32 0.35355338, %v2110_v7 }
 0x345   : > { %v2112_v17 = vsel %vm1865_vm6, %v2111_v8, -inf }
 0x346   : > { %2113 = vmax.xlane.f32.xlu0 %v2112_v17 }
 0x375   : > { %v1868_v9 = vpop.xlane.xlu1 %1867 }
 0x376   : > { %v1869_v10 = vsub.f32 %v3475_v12, %v1868_v9 }
 0x378   : > { %v1870_v11 = vmul.f32 1.442695, %v1869_v10 }
 0x37a   : > { %2848 = vpow2.f32 %v1870_v11 }
 0x384   : > { %v2849_v13 = vpop.eup %2848 }
 0x385   : > { %v1872_v14 = vsel %vm1865_vm6, %v2849_v13, 0.0 }
 0x386   : > { %1873 = vadd.xlane.f32.xlu0 %v1872_v14 }
 0x3c2   : > { %v1952_v18 = vpop.xlane.xlu1 %1951 }
 0x3c3   : > { %v1953_v19 = vsub.f32 %v1949_v58, %v1952_v18 }
 0x3c5   : > { %v1954_v20 = vmul.f32 1.442695, %v1953_v19 }
 0x3c7   : > { %2850 = vpow2.f32 %v1954_v20 }
 0x3ce   : > { %v2033_v21 = vpop.xlane.xlu0 %2032 }
 0x3cf   : > { %v2034_v23 = vsub.f32 %v2030_v3, %v2033_v21 }
 0x3d1   : > { %v2851_v24 = vpop.eup %2850  ;;  %v2035_v25 = vmul.f32 1.442695, %v2034_v23 }
 0x3d2   : > { %v1956_v12 = vsel %vm1865_vm6, %v2851_v24, 0.0 }
 0x3d3   : > { %2852 = vpow2.f32 %v2035_v25  ;;  %1957 = vadd.xlane.f32.xlu0 %v1956_v12  ;;  %v2114_v26 = vpop.xlane.xlu0 %2113 }
 0x3d4   : > { %v2115_v28 = vsub.f32 %v2111_v8, %v2114_v26 }
 0x3d5   : > { %v1827_v34 = vpop.f32.mrb[2].mxu0 }
 0x3d6   : > { %v2116_v29 = vmul.f32 1.442695, %v2115_v28  ;;  %v2599_v35 = vpop.f32.mrb[3].mxu0  ;;  %v2711_v51 = vadd.f32 %v2307_v50, %v1827_v34 }
 0x3d8   : > { %2854 = vpow2.f32 %v2116_v29 }
 0x3dd   : > { %v2853_v30 = vpop.eup %2852 }
 0x3de   : > { %v2037_v31 = vsel %vm1865_vm6, %v2853_v30, 0.0 }
 0x3df   : > { %2038 = vadd.xlane.f32.xlu0 %v2037_v31 }
 0x3e2   : > { %v2855_v32 = vpop.eup %2854 }
 0x3e3   : > { %v2118_v33 = vsel %vm1865_vm6, %v2855_v32, 0.0 }
 0x3e4   : > { %2119 = vadd.xlane.f32.xlu1 %v2118_v33 }
 0x413   : > { %v1874_v37 = vpop.xlane.xlu0 %1873 }
 0x414   : > { %2856 = vrcp.f32 %v1874_v37 }
 0x41e   : > { %v2857_v38 = vpop.eup %2856 }
 0x41f   : > { %v1876_v39 = vmul.f32 %v2857_v38, %v2849_v13 }
 0x421   : > { %1885 = vperm.xlu1 %2833, %v1876_v39   ;;  %1879 = vperm.xlu0 %2832, %v1876_v39  }
 0x425   : > { %2834 = vset.pattern.permute.xlu1 %v3071_v40  ;;  %2835 = vset.pattern.permute.xlu0 %v3072_v41 }
 0x426   : > { %1895 = vperm.xlu1 %2834, %v1876_v39   ;;  %1905 = vperm.xlu0 %2835, %v1876_v39  }
 0x42a   : > { %2836 = vset.pattern.permute.xlu1 %v3070_v16 }
 0x460   : > { %v1958_v42 = vpop.xlane.xlu0 %1957 }
 0x461   : > { %2858 = vrcp.f32 %v1958_v42 }
 0x46b   : > { %v2859_v43 = vpop.eup %2858 }
 0x46c   : > { %v2039_v44 = vpop.xlane.xlu0 %2038  ;;  %v1960_v45 = vmul.f32 %v2859_v43, %v2851_v24 }
 0x46d   : > { %2860 = vrcp.f32 %v2039_v44 }
 0x46e   : > { %1989 = vperm.xlu0 %2835, %v1960_v45   ;;  %1963 = vperm.xlu1 %2836, %v1960_v45  }
 0x471   : > { %v2120_v46 = vpop.xlane.xlu1 %2119 }
 0x472   : > { %2837 = vset.pattern.permute.xlu1 %v3069_v15  ;;  %2839 = vset.pattern.permute.xlu0 %v3070_v16  ;;  %2862 = vrcp.f32 %v2120_v46 }
 0x473   : > { %1969 = vperm.xlu1 %2837, %v1960_v45  }
 0x477   : > { %v2861_v47 = vpop.eup %2860  ;;  %2838 = vset.pattern.permute.xlu1 %v3071_v40 }
 0x478   : > { %1979 = vperm.xlu1 %2838, %v1960_v45   ;;  %v2041_v48 = vmul.f32 %v2861_v47, %v2853_v30 }
 0x47a   : > { %2044 = vperm.xlu0 %2839, %v2041_v48  }
 0x47c   : > { %2840 = vset.pattern.permute.xlu1 %v3069_v15  ;;  %v2863_v36 = vpop.eup %2862 }
 0x47d   : > { %2050 = vperm.xlu1 %2840, %v2041_v48   ;;  %v2122_v49 = vmul.f32 %v2863_v36, %v2855_v32 }
 0x47e   : > { %2841 = vset.pattern.permute.xlu0 %v3071_v40 }
 0x47f   : > { %2060 = vperm.xlu0 %2841, %v2041_v48  }
 0x481   : > { %2843 = vset.pattern.permute.xlu1 %v3070_v16 }
 0x482   : > { %2125 = vperm.xlu1 %2843, %v2122_v49  }
 0x483   : > { %2842 = vset.pattern.permute.xlu0 %v3072_v41 }
 0x484   : > { %2070 = vperm.xlu0 %2842, %v2041_v48  }
 0x486   : > { %2845 = vset.pattern.permute.xlu1 %v3071_v40 }
 0x487   : > { %2141 = vperm.xlu1 %2845, %v2122_v49  }
 0x488   : > { %2844 = vset.pattern.permute.xlu0 %v3069_v15 }
 0x489   : > { %2131 = vperm.xlu0 %2844, %v2122_v49  }
 0x48b   : > { %2846 = vset.pattern.permute.xlu1 %v3072_v41 }
 0x48d   : > { %2847 = vset.pattern.permute.xlu0 %v3072_v41 }
 0x4a0   : > { %v1886_v52 = vpop.permute.xlu1 %1885  ;;  %v1880_v53 = vpop.permute.xlu0 %1879 }
 0x4a1   : > { %v1888_v22 = vmul.f32 %v2711_v51, %v1886_v52  ;;  %v1882_v11 = vmul.f32 %v2711_v51, %v1880_v53 }
 0x4a3   : > { %1890 = vrot.lane.b32.xlu1 %v1888_v22, %s3064_s14 }
 0x4a5   : > { %v1896_v54 = vpop.permute.xlu1 %1895  ;;  %v1906_v55 = vpop.permute.xlu0 %1905 }
 0x4a6   : > { %v1898_v56 = vmul.f32 %v2711_v51, %v1896_v54  ;;  %v1908_v57 = vmul.f32 %v2711_v51, %v1906_v55 }
 0x4a8   : > { %1900 = vrot.lane.b32.xlu0 %v1898_v56, %s3066_s20  ;;  %1910 = vrot.lane.b32.xlu1 %v1908_v57, %s3068_s29 }
 0x4ed   : > { %v1964_v58 = vpop.permute.xlu1 %1963  ;;  %v1990_v27 = vpop.permute.xlu0 %1989 }
 0x4ee   : > { %v1992_v59 = vmul.f32 %v2711_v51, %v1990_v27  ;;  %v1966_v18 = vmul.f32 %v2711_v51, %v1964_v58 }
 0x4f0   : > { %1994 = vrot.lane.b32.xlu0 %v1992_v59, %s3068_s29 }
 0x4f2   : > { %v1970_v60 = vpop.permute.xlu1 %1969 }
 0x4f3   : > { %v1972_v61 = vmul.f32 %v2711_v51, %v1970_v60 }
 0x4f5   : > { %1974 = vrot.lane.b32.xlu1 %v1972_v61, %s3064_s14 }
 0x4f7   : > { %v1980_v62 = vpop.permute.xlu1 %1979 }
 0x4f8   : > { %v1982_v63 = vmul.f32 %v2711_v51, %v1980_v62 }
 0x4f9   : > { %v2045_v2 = vpop.permute.xlu0 %2044 }
 0x4fa   : > { %1984 = vrot.lane.b32.xlu1 %v1982_v63, %s3066_s20  ;;  %v2047_v31 = vmul.f32 %v2711_v51, %v2045_v2 }
 0x4fc   : > { %v2051_v3 = vpop.permute.xlu1 %2050 }
 0x4fd   : > { %v2053_v1 = vmul.f32 %v2711_v51, %v2051_v3 }
 0x4fe   : > { %v2061_v4 = vpop.permute.xlu0 %2060 }
 0x4ff   : > { %2055 = vrot.lane.b32.xlu0 %v2053_v1, %s3064_s14  ;;  %v2063_v5 = vmul.f32 %v2711_v51, %v2061_v4 }
 0x501   : > { %v2126_v0 = vpop.permute.xlu1 %2125 }
 0x502   : > { %v2128_v26 = vmul.f32 %v2711_v51, %v2126_v0 }
 0x503   : > { %2065 = vrot.lane.b32.xlu0 %v2063_v5, %s3066_s20  ;;  %v2071_v6 = vpop.permute.xlu0 %2070 }
 0x504   : > { %v2073_v7 = vmul.f32 %v2711_v51, %v2071_v6 }
 0x506   : > { %v2142_v8 = vpop.permute.xlu1 %2141  ;;  %2075 = vrot.lane.b32.xlu1 %v2073_v7, %s3068_s29 }
 0x507   : > { %v2144_v17 = vmul.f32 %v2711_v51, %v2142_v8 }
 0x508   : > { %v2132_v9 = vpop.permute.xlu0 %2131 }
 0x509   : > { %v2134_v10 = vmul.f32 %v2711_v51, %v2132_v9  ;;  %2146 = vrot.lane.b32.xlu0 %v2144_v17, %s3066_s20 }
 0x50b   : > { %2136 = vrot.lane.b32.xlu1 %v2134_v10, %s3064_s14  ;;  %s3073_s14 = smov [#allocation10]  }
 0x50f   : > { %2151 = vperm.xlu1 %2846, %v2122_v49  }
 0x515   : > { %v1891_v13 = vpop.permute.xlu1 %1890 }
 0x516   : > { %v1893_v14 = vadd.f32 %v1891_v13, %v1882_v11 }
 0x51a   : > { %v1911_v15 = vpop.permute.xlu1 %1910  ;;  %v1901_v19 = vpop.permute.xlu0 %1900 }
 0x51b   : > { %v1903_v43 = vadd.f32 %v1901_v19, %v1893_v14 }
 0x51d   : > { %v1913_v45 = vadd.f32 %v1911_v15, %v1903_v43 }
 0x562   : > { %v1995_v24 = vpop.permute.xlu0 %1994 }
 0x567   : > { %v1975_v16 = vpop.permute.xlu1 %1974 }
 0x568   : > { %v1977_v20 = vadd.f32 %v1975_v16, %v1966_v18 }
 0x56c   : > { %v1985_v21 = vpop.permute.xlu1 %1984 }
 0x56d   : > { %v1987_v23 = vadd.f32 %v1985_v21, %v1977_v20 }
 0x56f   : > { %v1997_v25 = vadd.f32 %v1995_v24, %v1987_v23 }
 0x571   : > { %2161 = vrot.lane.b32.xlu1 %v1997_v25, %s3063_s11  ;;  %v2056_v30 = vpop.permute.xlu0 %2055  ;;  %s3562_s11 = scalar_lea.hbm %s3614_s7, %s2309_s16 }
 0x572   : > { %v2058_v33 = vadd.f32 %v2056_v30, %v2047_v31 }
 0x575   : > { %v2066_v32 = vpop.permute.xlu0 %2065 }
 0x576   : > { %v2068_v35 = vadd.f32 %v2066_v32, %v2058_v33 }
 0x578   : > { %v2076_v12 = vpop.permute.xlu1 %2075 }
 0x579   : > { %v2078_v38 = vadd.f32 %v2076_v12, %v2068_v35 }
 0x57b   : > { %v2147_v39 = vpop.permute.xlu0 %2146 }
 0x57d   : > { %v2137_v28 = vpop.permute.xlu1 %2136 }
 0x57e   : > { %v2139_v29 = vadd.f32 %v2137_v28, %v2128_v26 }
 0x580   : > { %v2149_v40 = vadd.f32 %v2147_v39, %v2139_v29 }
 0x58e   : > { %v2152_v34 = vpop.permute.xlu1 %2151 }
 0x58f   : > { %v2154_v37 = vmul.f32 %v2711_v51, %v2152_v34 }
 0x591   : > { %2156 = vrot.lane.b32.xlu0 %v2154_v37, %s3068_s29 }
 0x595   : > { %2165 = vrot.lane.b32.xlu0 %v2078_v38, %s3065_s13  ;;  %s2982_s13 = sshll.u32 %s3073_s14, 4  ;;  %s2983_s13 = int_to_ptr.vmem [resolvable:$false] %s2982_s13 }
 0x596   : > { %s2984_s20 = scalar_lea.vmem %s2983_s13, 256  ;;  %p2985_p12 = scmp.lt.s32.totalorder %s3564_s9, %s2983_s13 }
 0x597   : > { %p2986_p1 = scmp.lt.s32.totalorder %s2984_s20, %s2978_s17 }
 0x599   : > { %p2987_p2 = por %p2986_p1, %p2985_p12 }
 0x59b   : > { %p2988_p4 = pnand %p2987_p2, %p2981_p7 }
 0x5e3   : > { %v2162_v44 = vpop.permute.xlu1 %2161 }
 0x5e4   : > { %v2172_v47 = vsel %vm1832_vm2, %v1913_v45, %v2162_v44 }
 0x603   : > { %v2157_v41 = vpop.permute.xlu0 %2156 }
 0x604   : > { %v2159_v42 = vadd.f32 %v2157_v41, %v2149_v40 }
 0x606   : > { %2169 = vrot.lane.b32.xlu1 %v2159_v42, %s3067_s15 }
 0x607   : > { %v2166_v46 = vpop.permute.xlu0 %2165 }
 0x608   : > { %v2174_v48 = vsel %vm2173_vm7, %v2172_v47, %v2166_v46 }
 0x678   : > { %v2170_v36 = vpop.permute.xlu1 %2169 }
 0x679   : > { %v2176_v49 = vsel %vm2175_vm8, %v2174_v48, %v2170_v36 }
 0x67a   : > { %2177 = vst.msk [vmem:[%s337_s30] sm:$0xff] %vm350_vm1, %v2176_v49 }
 0x67b   : > { %2991 = shalt.err (!%p2988_p4)
}
 0x67c   : > { %s2992_s8 = scalar_lea.hbm %s3562_s11, 128  ;;  %s2996_s12 = scalar_lea.hbm %s3614_s7, 256 }
 0x67d   : > { %p2993_p0 = scmp.ne.s32.totalorder %s3562_s11, %s2992_s8  ;;  %p2997_p8 = scmp.lt.u32.totalorder %s3562_s11, %s3614_s7 }
 0x67e   : > { %p2998_p13 = scmp.lt.u32.totalorder %s2996_s12, %s2992_s8  ;;  %p3000_p10 = scmp.lt.u32.totalorder %s2992_s8, %s3562_s11 }
 0x67f   : > { %p2994_p9 = pnand %p2993_p0, %p3268_p5 }
 0x680   : > { %p2999_p6 = por %p2998_p13, %p2997_p8 }
 0x681   : > { %p2995_p11 = pneg %p2994_p9 }
 0x682   : > { %p3001_p3 = por %p3000_p10, %p2999_p6 }
 0x684   : > { %p3002_p7 = pnand %p3001_p3, %p2995_p11 }
 0x686   : > { %3005 = shalt.err (!%p3002_p7)
}
 0x687   : > { %2754 = dma.vmem_to_hbm [thread:$0]  (%p3268_p5), %s3564_s9, 128, %s3562_s11, %s2179_s28  }
 0x688 PF: > { %s3634_s30 = sld [smem:[#allocation15_spill]]  ;;  %s2204_s23 = sand.u32 1, %s3040_s24  }
 0x689   : > { %p3636_p1 = scmp.ge.s32.totalorder %s3052_s27, 2  ;;  %s2205_s10 = scalar_lea.sflag [#allocation4], %s2204_s23 }
 0x68e   : > { %p3635_p12 = scmp.ne.s32.totalorder %s3634_s30, 0 }
 0x690   : > { %p2771_p2 = pnand %p3636_p1, %p3635_p12 }
 0x692   : > { %3035 = dma.done.wait (!%p2771_p2), %s2205_s10, 128  }
 0x693   : > { %3037 = vsyncadd (!%p2771_p2), %s2205_s10, 4294967168  ;;  %p22_p4 = scmp.ge.s32.totalorder %s3254_s22, 4   ;;  %s3637_s24 = smov %s3044_s25 }
 0x694   : > { %s3638_s25 = smov %s3048_s26  ;;  %s3639_s26 = smov %s3264_s18 }
 0x695   : > { %s3640_s27 = smov %s3254_s22  ;;  %24 = sbr.rel (!%p22_p4) target bundleno = 7 (0x7), region = 105 }
 0x69c   :  { %2210 = vsyncpa [#allocation3], 1 }
 0x69d   :  { %2212 = vsyncpa [#allocation3 + $0x1], 1 }
 0x69e   :  { %2213 = vsyncpa [#allocation6], 1 }
 0x69f   :  { %2214 = vsyncpa [#allocation9], 1 }
 0x6a0   :  { %2215 = vsyncpa [#allocation4], 1 }
 0x6a1   :  { %2217 = vsyncpa [#allocation4 + $0x1], 1 }

</bundles_post_ra>
